<compile_context>
chip_gen: v6e
topology: v6e:2x2x1
jax: 0.10.0
libtpu: 0.0.40
codegen_flags: <defaults>
</compile_context>

<pallas_src>
import functools

import numpy as np
import jax
import jax.numpy as jnp
from jax import lax
from jax.experimental import pallas as pl
from jax.experimental.pallas import tpu as pltpu

EPS = 1e-5
ACT_DTYPE = jnp.bfloat16               # intermediate activations in HBM
VMEM_LIMIT_BYTES = 40 * 1024 * 1024    # < v7x 64 MiB physical; plenty of headroom


# ----------------------------------------------------------------------------
# In-kernel helpers (shared by the standalone conv and the fused residual chain)
# ----------------------------------------------------------------------------
def _stage_xcol(xcol_ref, xb, *, H, W, Cin, KW, pad):
    """Write kw-folded im2col rows of a zero-padded image directly into xcol.

    xcol_ref : [Hp, W, KW*Cin] bf16, xcol[hp, w, kw*Cin + c] == xpad[hp, w+kw, c]
    xb       : [H, W, Cin]     bf16 value (unpadded image).

    Only interior positions are written; pad rows / edge columns of xcol_ref
    must already be zero (they are zeroed once and never touched here, so they
    stay zero across convolutions and grid steps).
    """
    for kw in range(KW):                       # static, unrolled
        width = W - abs(kw - pad)
        dst_lo = max(0, pad - kw)
        src_lo = max(0, kw - pad)
        xcol_ref[pad:pad + H, dst_lo:dst_lo + width, kw * Cin:(kw + 1) * Cin] = (
            xb[:, src_lo:src_lo + width, :])


def _conv_from_xcol(xcol_ref, w_ref, *, H, W, Cin, Cout, KH, KW, pad):
    """out[h*W+w, co] = sum_{kh,kw,c} xpad[h+kh, w+kw, c] * w[kh,kw,c,co].

    KH taps are folded into the matmul's OUTPUT columns (w_ref is
    [KW*Cin, KH*Cout]); a single MXU dot with N = KH*Cout is followed by a VPU
    epilogue summing KH row/column-shifted slices.  f32 accumulation.
    """
    Hp = H + 2 * pad
    xcol = xcol_ref[...].reshape(Hp * W, KW * Cin)     # free relayout (W % 8 == 0)
    big = jnp.dot(xcol, w_ref[...], preferred_element_type=jnp.float32)
    acc = big[0:H * W, 0:Cout]
    for kh in range(1, KH):                            # static, unrolled
        acc = acc + big[kh * W:kh * W + H * W, kh * Cout:(kh + 1) * Cout]
    return acc                                         # [H*W, Cout] f32


# ----------------------------------------------------------------------------
# Kernel 1: fused Conv2d (stride 1, "same") + per-channel affine (bias / folded
# BatchNorm) + PReLU (alpha == 1 makes PReLU an identity).
# ----------------------------------------------------------------------------
def _conv_kernel(x_ref, w_ref, aff_ref, o_ref, xcol_ref, *, KH, KW, H, W, pad):
    # x_ref:    [H, W, Cin]            f32/bf16 input (one batch element)
    # w_ref:    [KW*Cin, KH*Cout]      bf16 folded weights
    # aff_ref:  [3, Cout]              f32 rows = (scale, shift, prelu_alpha)
    # o_ref:    [H*W, Cout]            output (bf16 or f32)
    # xcol_ref: [Hp, W, KW*Cin]        bf16 VMEM scratch
    Cin = x_ref.shape[-1]
    Cout = o_ref.shape[-1]
    # Zero the whole xcol scratch each step: only pad rows / edge columns need
    # it, but this kernel runs only a handful of grid steps and per-step
    # zeroing is multicore-safe on v7x (each core owns its own scratch).
    xcol_ref[...] = jnp.zeros_like(xcol_ref)
    _stage_xcol(xcol_ref, x_ref[...].astype(jnp.bfloat16),
                H=H, W=W, Cin=Cin, KW=KW, pad=pad)
    acc = _conv_from_xcol(xcol_ref, w_ref, H=H, W=W, Cin=Cin, Cout=Cout,
                          KH=KH, KW=KW, pad=pad)
    y = acc * aff_ref[0:1, :] + aff_ref[1:2, :]
    o_ref[...] = jnp.where(y > 0, y, aff_ref[2:3, :] * y).astype(o_ref.dtype)


def _fold_weight(w):
    """[KH, KW, Cin, Cout] -> [KW*Cin, KH*Cout] bf16 (kh folded into columns)."""
    KH, KW, Cin, Cout = w.shape
    return (jnp.transpose(w, (1, 2, 0, 3))
            .reshape(KW * Cin, KH * Cout).astype(jnp.bfloat16))


def _fold_weight_stack(w):
    """[B, KH, KW, Cin, Cout] -> [B, KW*Cin, KH*Cout] bf16."""
    B, KH, KW, Cin, Cout = w.shape
    return (jnp.transpose(w, (0, 2, 3, 1, 4))
            .reshape(B, KW * Cin, KH * Cout).astype(jnp.bfloat16))


def conv_affine_prelu(x, w, scale, shift, alpha, pad, out_dtype=ACT_DTYPE):
    """x: [N,H,W,Cin], w: [KH,KW,Cin,Cout]; returns [N,H,W,Cout] out_dtype."""
    N, H, W, Cin = x.shape
    KH, KW, _, Cout = w.shape
    assert KH == 2 * pad + 1 and KW == 2 * pad + 1, "expect 'same' padding"
    Hp = H + 2 * pad

    wf = _fold_weight(w)
    aff = jnp.stack([scale, shift, alpha]).astype(jnp.float32)

    kernel = functools.partial(_conv_kernel, KH=KH, KW=KW, H=H, W=W, pad=pad)
    flops = 2 * N * Hp * W * (KW * Cin) * (KH * Cout)
    bytes_accessed = (x.size * x.dtype.itemsize + wf.size * 2 + aff.size * 4
                      + N * H * W * Cout * jnp.dtype(out_dtype).itemsize)

    out = pl.pallas_call(
        kernel,
        out_shape=jax.ShapeDtypeStruct((N, H * W, Cout), out_dtype),
        grid=(N,),
        in_specs=[
            pl.BlockSpec((None, H, W, Cin), lambda n: (n, 0, 0, 0)),
            pl.BlockSpec((KW * Cin, KH * Cout), lambda n: (0, 0)),
            pl.BlockSpec((3, Cout), lambda n: (0, 0)),
        ],
        out_specs=pl.BlockSpec((None, H * W, Cout), lambda n: (n, 0, 0)),
        scratch_shapes=[pltpu.VMEM((Hp, W, KW * Cin), jnp.bfloat16)],
        compiler_params=pltpu.CompilerParams(
            dimension_semantics=("parallel",),
            vmem_limit_bytes=VMEM_LIMIT_BYTES),
        cost_estimate=pl.CostEstimate(flops=int(flops), transcendentals=0,
                                      bytes_accessed=int(bytes_accessed)),
    )(x, wf, aff)
    return out.reshape(N, H, W, Cout)


# ----------------------------------------------------------------------------
# Kernel 2: ALL 16 residual blocks fused in ONE pallas_call.
#   per block:  y = PReLU(BN1(conv1(h)));  h = h + BN2(conv2(y))
# grid = (N parallel, B arbitrary); the running activation h lives in a
# persistent f32 VMEM scratch and never touches HBM between blocks.
# ----------------------------------------------------------------------------
def _reschain_kernel(x_ref, w1_ref, w2_ref, aff_ref, o_ref, h_ref, xcol_ref,
                     *, H, W, C):
    KH = KW = 3
    pad = 1
    b = pl.program_id(1)

    @pl.when(b == 0)
    def _():
        # Zero the im2col scratch once per image (pad rows / edge columns stay
        # zero afterwards) and load the block input into the persistent f32
        # running activation.  Runs at b==0 of EVERY image, so it is safe when
        # the batch axis is sharded across v7x's two TensorCores.
        xcol_ref[...] = jnp.zeros_like(xcol_ref)
        h_ref[...] = x_ref[...].reshape(H * W, C).astype(jnp.float32)

    def conv3x3(w_ref_, act_f32):
        _stage_xcol(xcol_ref, act_f32.reshape(H, W, C).astype(jnp.bfloat16),
                    H=H, W=W, Cin=C, KW=KW, pad=pad)
        return _conv_from_xcol(xcol_ref, w_ref_, H=H, W=W, Cin=C, Cout=C,
                               KH=KH, KW=KW, pad=pad)

    # conv1 + BN1 + PReLU  (intermediate y stays in VMEM/registers)
    y = conv3x3(w1_ref, h_ref[...]) * aff_ref[0:1, :] + aff_ref[1:2, :]
    y = jnp.where(y > 0, y, aff_ref[2:3, :] * y)
    # conv2 + BN2 + skip add (f32)
    r = conv3x3(w2_ref, y) * aff_ref[3:4, :] + aff_ref[4:5, :]
    h_ref[...] = h_ref[...] + r

    @pl.when(b == pl.num_programs(1) - 1)
    def _():
        o_ref[...] = h_ref[...].astype(o_ref.dtype)


def fused_resblock_chain(x, w1_stack, w2_stack, aff_stack):
    """x: [N,H,W,64]; w*_stack: [B, 3*64, 3*64] bf16; aff_stack: [B,5,64] f32."""
    N, H, W, C = x.shape
    B = w1_stack.shape[0]
    Hp = H + 2

    kernel = functools.partial(_reschain_kernel, H=H, W=W, C=C)
    flops = 2 * N * B * 2 * Hp * W * (3 * C) * (3 * C)
    bytes_accessed = (x.size * x.dtype.itemsize
                      + N * (w1_stack.size + w2_stack.size) * 2
                      + N * B * aff_stack.size * 4 // B
                      + N * H * W * C * jnp.dtype(ACT_DTYPE).itemsize)

    out = pl.pallas_call(
        kernel,
        out_shape=jax.ShapeDtypeStruct((N, H * W, C), ACT_DTYPE),
        grid=(N, B),
        in_specs=[
            pl.BlockSpec((None, H, W, C), lambda n, b: (n, 0, 0, 0)),
            pl.BlockSpec((None, 3 * C, 3 * C), lambda n, b: (b, 0, 0)),
            pl.BlockSpec((None, 3 * C, 3 * C), lambda n, b: (b, 0, 0)),
            pl.BlockSpec((None, 5, C), lambda n, b: (b, 0, 0)),
        ],
        out_specs=pl.BlockSpec((None, H * W, C), lambda n, b: (n, 0, 0)),
        scratch_shapes=[pltpu.VMEM((H * W, C), jnp.float32),      # running act
                        pltpu.VMEM((Hp, W, 3 * C), jnp.bfloat16)],  # im2col
        compiler_params=pltpu.CompilerParams(
            dimension_semantics=("parallel", "arbitrary"),
            vmem_limit_bytes=VMEM_LIMIT_BYTES),
        cost_estimate=pl.CostEstimate(flops=int(flops), transcendentals=0,
                                      bytes_accessed=int(bytes_accessed)),
    )(x, w1_stack, w2_stack, aff_stack)
    return out.reshape(N, H, W, C)


# ----------------------------------------------------------------------------
# Pure-JAX reference conv (same bf16 rounding points, f32 accumulation).
# ----------------------------------------------------------------------------
def conv_affine_prelu_ref(x, w, scale, shift, alpha, pad, out_dtype=ACT_DTYPE):
    xb = x.astype(jnp.bfloat16).astype(jnp.float32)
    wb = w.astype(jnp.bfloat16).astype(jnp.float32)
    y = lax.conv_general_dilated(
        xb, wb, window_strides=(1, 1), padding=[(pad, pad), (pad, pad)],
        dimension_numbers=("NHWC", "HWIO", "NHWC"),
        precision=lax.Precision.HIGHEST)
    y = y * scale.reshape(1, 1, 1, -1) + shift.reshape(1, 1, 1, -1)
    a = alpha.reshape(1, 1, 1, -1)
    return jnp.where(y > 0, y, a * y).astype(out_dtype)


# ----------------------------------------------------------------------------
# Glue (data movement / parameter folding) in plain JAX.
# ----------------------------------------------------------------------------
def pixel_shuffle_nhwc(x, r):
    # PyTorch PixelShuffle: out[n, c, h*r+i, w*r+j] = in[n, c*r*r + i*r + j, h, w]
    N, H, W, C = x.shape
    Co = C // (r * r)
    x = x.reshape(N, H, W, Co, r, r)
    x = jnp.transpose(x, (0, 1, 4, 2, 5, 3))
    return x.reshape(N, H * r, W * r, Co)


def fold_bn(conv_bias, bn):
    s = bn["gamma"] / jnp.sqrt(bn["var"] + EPS)
    t = bn["beta"] - bn["mean"] * s + conv_bias * s
    return s, t


def resblock_chain(x, blocks, use_pallas=True):
    """16 residual blocks.  blocks: param dict stacked on a leading axis."""
    s1, t1 = fold_bn(blocks["b1"], blocks["bn1"])       # [B, 64]
    s2, t2 = fold_bn(blocks["b2"], blocks["bn2"])
    a1 = jnp.broadcast_to(blocks["alpha"][:, None], s1.shape).astype(jnp.float32)
    if use_pallas:
        w1f = _fold_weight_stack(blocks["w1"])
        w2f = _fold_weight_stack(blocks["w2"])
        aff = jnp.stack([s1, t1, a1, s2, t2], axis=1).astype(jnp.float32)
        return fused_resblock_chain(x, w1f, w2f, aff)
    else:
        def step(h, blk):
            bs1, bt1, ba1, bs2, bt2, bw1, bw2 = blk
            y = conv_affine_prelu_ref(h, bw1, bs1, bt1, ba1, pad=1,
                                      out_dtype=jnp.float32)
            y = conv_affine_prelu_ref(y, bw2, bs2, bt2, jnp.ones_like(bs2),
                                      pad=1, out_dtype=jnp.float32)
            return h + y, None
        h0 = x.astype(jnp.float32)
        h, _ = lax.scan(step, h0, (s1, t1, a1, s2, t2,
                                   blocks["w1"], blocks["w2"]))
        return h.astype(ACT_DTYPE)


def init_params(key, block=16, scale=2):
    keys = iter(jax.random.split(key, 512))

    def conv(cin, cout, k):
        w = jax.random.normal(next(keys), (k, k, cin, cout), jnp.float32)
        w = w / np.sqrt(k * k * cin)
        b = 0.01 * jax.random.normal(next(keys), (cout,), jnp.float32)
        return w, b

    def bn(c):
        # Inference-mode running stats; mildly damped so the 16-block residual
        # chain stays numerically well-behaved with untrained random weights.
        return dict(
            gamma=0.5 + 0.05 * jax.random.normal(next(keys), (c,), jnp.float32),
            beta=0.05 * jax.random.normal(next(keys), (c,), jnp.float32),
            mean=0.05 * jax.random.normal(next(keys), (c,), jnp.float32),
            var=1.0 + jax.random.uniform(next(keys), (c,), jnp.float32),
        )

    p = {}
    p["conv1_w"], p["conv1_b"] = conv(3, 64, 9)
    p["prelu_alpha"] = jnp.float32(0.25)          # nn.PReLU() default

    blocks = []
    for _ in range(block):
        w1, b1 = conv(64, 64, 3)
        bn1 = bn(64)
        w2, b2 = conv(64, 64, 3)
        bn2 = bn(64)
        blocks.append(dict(w1=w1, b1=b1, bn1=bn1, w2=w2, b2=b2, bn2=bn2,
                           alpha=jnp.float32(0.25)))
    p["blocks"] = jax.tree_util.tree_map(lambda *xs: jnp.stack(xs), *blocks)

    p["conv2_w"], p["conv2_b"] = conv(64, 64, 3)
    p["bn"] = bn(64)
    p["conv3_w"], p["conv3_b"] = conv(64, 64 * scale * scale, 3)
    p["conv4_w"], p["conv4_b"] = conv(64, 3, 3)
    # NOTE: `scale` is deliberately NOT stored in params (it must stay static).
    return p


def generator_forward(params, x_nchw, *, scale, use_pallas=True):
    p = params
    r = scale                                    # static Python int
    conv_fn = conv_affine_prelu if use_pallas else conv_affine_prelu_ref
    x = jnp.transpose(x_nchw, (0, 2, 3, 1)).astype(jnp.float32)   # NCHW -> NHWC

    ones64 = jnp.ones((64,), jnp.float32)
    a0 = p["prelu_alpha"]                        # shared PReLU slope
    a64 = jnp.full((64,), a0)

    # conv1 (9x9) + shared PReLU.  Pallas path zero-pads Cin 3 -> 8 (zero
    # weights) so the in-kernel im2col channel strips are layout-friendly.
    if use_pallas:
        x_in = jnp.pad(x, ((0, 0), (0, 0), (0, 0), (0, 5)))
        w1 = jnp.pad(p["conv1_w"], ((0, 0), (0, 0), (0, 5), (0, 0)))
    else:
        x_in, w1 = x, p["conv1_w"]
    x1 = conv_fn(x_in, w1, ones64, p["conv1_b"], a64, pad=4)      # bf16

    # 16 residual blocks (single fused pallas_call on the Pallas path).
    res = resblock_chain(x1, p["blocks"], use_pallas)

    # conv2 + BN, then global skip connection (f32 add on bf16 operands).
    s, t = fold_bn(p["conv2_b"], p["bn"])
    res = conv_fn(res, p["conv2_w"], s, t, ones64, pad=1)
    h = x1.astype(jnp.float32) + res.astype(jnp.float32)

    # Two upsampling stages reusing the SAME conv3 weights (as in the PyTorch
    # forward).  The shared PReLU has a single scalar slope, so applying it
    # before the pixel shuffle (fused into the conv epilogue) is identical.
    cout3 = 64 * r * r
    ones_c3 = jnp.ones((cout3,), jnp.float32)
    a_c3 = jnp.full((cout3,), a0)
    for _ in range(2):
        h = conv_fn(h, p["conv3_w"], ones_c3, p["conv3_b"], a_c3, pad=1)
        h = pixel_shuffle_nhwc(h, r)

    # conv4 (no activation, f32 output).  Pallas path pads Cout 3 -> 128 so the
    # output stores are lane-dense; zero-weight channels are sliced away.
    if use_pallas:
        co = 128
        w4 = jnp.pad(p["conv4_w"], ((0, 0), (0, 0), (0, 0), (0, co - 3)))
        b4 = jnp.pad(p["conv4_b"], ((0, co - 3),))
        ones_o = jnp.ones((co,), jnp.float32)
        out = conv_fn(h, w4, ones_o, b4, ones_o, pad=1,
                      out_dtype=jnp.float32)[..., :3]
    else:
        ones3 = jnp.ones((3,), jnp.float32)
        out = conv_fn(h, p["conv4_w"], ones3, p["conv4_b"], ones3, pad=1,
                      out_dtype=jnp.float32)

    return jnp.transpose(out, (0, 3, 1, 2))      # NHWC -> NCHW


if __name__ == "__main__":
    key = jax.random.PRNGKey(0)
    pkey, xkey, tkey = jax.random.split(key, 3)
    params = init_params(pkey, block=16, scale=2)

    # ---- unit check 1: standalone fused conv kernel vs lax.conv -------------
    k1, k2 = jax.random.split(tkey)
    xt = jax.random.normal(k1, (2, 16, 16, 64), jnp.float32)
    wt = jax.random.normal(k2, (3, 3, 64, 64), jnp.float32) / np.sqrt(9 * 64)
    sc = jnp.linspace(0.5, 1.5, 64).astype(jnp.float32)
    sh = jnp.linspace(-0.2, 0.2, 64).astype(jnp.float32)
    al = jnp.full((64,), 0.25, jnp.float32)
    conv_p = jax.jit(functools.partial(conv_affine_prelu, pad=1,
                                       out_dtype=jnp.float32))
    got = jax.block_until_ready(conv_p(xt, wt, sc, sh, al))
    want = conv_affine_prelu_ref(xt, wt, sc, sh, al, pad=1, out_dtype=jnp.float32)
    np.testing.assert_allclose(np.asarray(got), np.asarray(want),
                               rtol=1e-2, atol=1e-2)

    # ---- unit check 2: fused 16-block chain vs lax.conv scan ----------------
    x1t = jax.random.normal(k1, (2, 16, 16, 64), jnp.float32).astype(ACT_DTYPE)
    chain_p = jax.jit(lambda xx, bb: resblock_chain(xx, bb, use_pallas=True))
    chain_r = jax.jit(lambda xx, bb: resblock_chain(xx, bb, use_pallas=False))
    got_c = jax.block_until_ready(chain_p(x1t, params["blocks"]))
    ref_c = jax.block_until_ready(chain_r(x1t, params["blocks"]))
    np.testing.assert_allclose(np.asarray(got_c.astype(jnp.float32)),
                               np.asarray(ref_c.astype(jnp.float32)),
                               rtol=5e-2, atol=5e-2)

    # ---- end-to-end forward (PyTorch-style NCHW in / out) -------------------
    x = jax.random.normal(xkey, (2, 3, 16, 16), jnp.float32)
    fwd = jax.jit(functools.partial(generator_forward, scale=2, use_pallas=True))
    out = jax.block_until_ready(fwd(params, x))
    assert out.shape == (2, 3, 64, 64), out.shape
    assert out.dtype == jnp.float32
    assert bool(jnp.all(jnp.isfinite(out)))

    ref_fwd = jax.jit(functools.partial(generator_forward, scale=2,
                                        use_pallas=False))
    ref = jax.block_until_ready(ref_fwd(params, x))
    o = np.asarray(out, np.float64)
    rf = np.asarray(ref, np.float64)
    rel_l2 = np.linalg.norm(o - rf) / (np.linalg.norm(rf) + 1e-12)
    assert rel_l2 < 3e-2, f"relative L2 error too large: {rel_l2}"
    np.testing.assert_allclose(o, rf, rtol=1e-1, atol=1e-1)

    print("KERNEL_OK")
</pallas_src>

<mosaic_0001>
module attributes {stable_mosaic.version = 11 : i64} {
  func.func @_conv_kernel(%arg0: i32, %arg1: memref<1x16x16x64xf32, #tpu.memory_space<vmem>>, %arg2: memref<192x192xbf16, #tpu.memory_space<vmem>>, %arg3: memref<3x64xf32, #tpu.memory_space<vmem>>, %arg4: memref<1x256x64xf32, #tpu.memory_space<vmem>>, %arg5: memref<18x16x192xbf16, #tpu.memory_space<vmem>>) attributes {dimension_semantics = [#tpu.dimension_semantics<parallel>], iteration_bounds = array<i64: 2>, scalar_prefetch = 0 : i64, scratch_operands = 1 : i64, tpu.core_type = #tpu.core_type<tc>, window_params = [{transform_indices = @transform_0, window_bounds = array<i64: 1, 16, 16, 64>}, {pipeline_mode = #tpu.pipeline_mode<synchronous>, transform_indices = @transform_1, window_bounds = array<i64: 192, 192>}, {pipeline_mode = #tpu.pipeline_mode<synchronous>, transform_indices = @transform_2, window_bounds = array<i64: 3, 64>}, {transform_indices = @transform_3, window_bounds = array<i64: 1, 256, 64>}]} {
    %cst = arith.constant 0.000000e+00 : bf16
    %0 = vector.broadcast %cst : bf16 to vector<18x16x192xbf16>
    %c0 = arith.constant 0 : index
    %c0_0 = arith.constant 0 : index
    %c0_1 = arith.constant 0 : index
    %1 = vector.load %arg5[%c0, %c0_0, %c0_1] : memref<18x16x192xbf16, #tpu.memory_space<vmem>>, vector<18x16x192xbf16>
    tpu.vector_store %arg5[%c0, %c0_0, %c0_1], %0 {strides = array<i32>} : memref<18x16x192xbf16, #tpu.memory_space<vmem>>, vector<18x16x192xbf16>,
    %c0_2 = arith.constant 0 : index
    %c0_3 = arith.constant 0 : index
    %c0_4 = arith.constant 0 : index
    %c0_5 = arith.constant 0 : index
    %2 = vector.load %arg1[%c0_2, %c0_3, %c0_4, %c0_5] : memref<1x16x16x64xf32, #tpu.memory_space<vmem>>, vector<1x16x16x64xf32>
    %3 = vector.shape_cast %2 : vector<1x16x16x64xf32> to vector<16x16x64xf32>
    %4 = arith.truncf %3 : vector<16x16x64xf32> to vector<16x16x64xbf16>
    %5 = vector.extract_strided_slice %4 {offsets = [0, 0, 0], sizes = [16, 15, 64], strides = [1, 1, 1]} : vector<16x16x64xbf16> to vector<16x15x64xbf16>
    %c1 = arith.constant 1 : index
    %c1_6 = arith.constant 1 : index
    %c0_7 = arith.constant 0 : index
    %6 = vector.load %arg5[%c1, %c1_6, %c0_7] : memref<18x16x192xbf16, #tpu.memory_space<vmem>>, vector<16x15x64xbf16>
    tpu.vector_store %arg5[%c1, %c1_6, %c0_7], %5 {strides = array<i32>} : memref<18x16x192xbf16, #tpu.memory_space<vmem>>, vector<16x15x64xbf16>,
    %c1_8 = arith.constant 1 : index
    %c0_9 = arith.constant 0 : index
    %c64 = arith.constant 64 : index
    %7 = vector.load %arg5[%c1_8, %c0_9, %c64] : memref<18x16x192xbf16, #tpu.memory_space<vmem>>, vector<16x16x64xbf16>
    tpu.vector_store %arg5[%c1_8, %c0_9, %c64], %4 {strides = array<i32>} : memref<18x16x192xbf16, #tpu.memory_space<vmem>>, vector<16x16x64xbf16>,
    %8 = vector.extract_strided_slice %4 {offsets = [0, 1, 0], sizes = [16, 15, 64], strides = [1, 1, 1]} : vector<16x16x64xbf16> to vector<16x15x64xbf16>
    %c1_10 = arith.constant 1 : index
    %c0_11 = arith.constant 0 : index
    %c128 = arith.constant 128 : index
    %9 = vector.load %arg5[%c1_10, %c0_11, %c128] : memref<18x16x192xbf16, #tpu.memory_space<vmem>>, vector<16x15x64xbf16>
    tpu.vector_store %arg5[%c1_10, %c0_11, %c128], %8 {strides = array<i32>} : memref<18x16x192xbf16, #tpu.memory_space<vmem>>, vector<16x15x64xbf16>,
    %c0_12 = arith.constant 0 : index
    %c0_13 = arith.constant 0 : index
    %c0_14 = arith.constant 0 : index
    %10 = vector.load %arg5[%c0_12, %c0_13, %c0_14] : memref<18x16x192xbf16, #tpu.memory_space<vmem>>, vector<18x16x192xbf16>
    %11 = vector.shape_cast %10 : vector<18x16x192xbf16> to vector<288x192xbf16>
    %c0_15 = arith.constant 0 : index
    %c0_16 = arith.constant 0 : index
    %12 = vector.load %arg2[%c0_15, %c0_16] : memref<192x192xbf16, #tpu.memory_space<vmem>>, vector<192x192xbf16>
    %cst_17 = arith.constant dense<0.000000e+00> : vector<288x192xf32>
    %13 = tpu.matmul %11, %12, %cst_17 {dimension_numbers = #tpu.dot_dimension_numbers<[1], [0], [0], [1], [0, 0, 1, 1], [], []>} : vector<288x192xbf16>, vector<192x192xbf16>, vector<288x192xf32> -> vector<288x192xf32>
    %14 = vector.extract_strided_slice %13 {offsets = [0, 0], sizes = [256, 64], strides = [1, 1]} : vector<288x192xf32> to vector<256x64xf32>
    %15 = vector.extract_strided_slice %13 {offsets = [16, 64], sizes = [256, 64], strides = [1, 1]} : vector<288x192xf32> to vector<256x64xf32>
    %16 = arith.addf %14, %15 : vector<256x64xf32>
    %17 = vector.extract_strided_slice %13 {offsets = [32, 128], sizes = [256, 64], strides = [1, 1]} : vector<288x192xf32> to vector<256x64xf32>
    %18 = arith.addf %16, %17 : vector<256x64xf32>
    %c0_18 = arith.constant 0 : index
    %c0_19 = arith.constant 0 : index
    %19 = vector.load %arg3[%c0_18, %c0_19] : memref<3x64xf32, #tpu.memory_space<vmem>>, vector<1x64xf32>
    %20 = vector.broadcast %19 : vector<1x64xf32> to vector<256x64xf32>
    %21 = arith.mulf %18, %20 : vector<256x64xf32>
    %c1_20 = arith.constant 1 : index
    %c0_21 = arith.constant 0 : index
    %22 = vector.load %arg3[%c1_20, %c0_21] : memref<3x64xf32, #tpu.memory_space<vmem>>, vector<1x64xf32>
    %23 = vector.broadcast %22 : vector<1x64xf32> to vector<256x64xf32>
    %24 = arith.addf %21, %23 : vector<256x64xf32>
    %cst_22 = arith.constant 0.000000e+00 : f32
    %25 = vector.broadcast %cst_22 : f32 to vector<256x64xf32>
    %26 = arith.cmpf ogt, %24, %25 : vector<256x64xf32>
    %c2 = arith.constant 2 : index
    %c0_23 = arith.constant 0 : index
    %27 = vector.load %arg3[%c2, %c0_23] : memref<3x64xf32, #tpu.memory_space<vmem>>, vector<1x64xf32>
    %28 = vector.broadcast %27 : vector<1x64xf32> to vector<256x64xf32>
    %29 = arith.mulf %28, %24 : vector<256x64xf32>
    %30 = arith.select %26, %24, %29 : vector<256x64xi1>, vector<256x64xf32>
    %c0_24 = arith.constant 0 : index
    %c0_25 = arith.constant 0 : index
    %c0_26 = arith.constant 0 : index
    %31 = vector.load %arg4[%c0_24, %c0_25, %c0_26] : memref<1x256x64xf32, #tpu.memory_space<vmem>>, vector<1x256x64xf32>
    %32 = vector.shape_cast %31 : vector<1x256x64xf32> to vector<256x64xf32>
    %33 = vector.shape_cast %30 : vector<256x64xf32> to vector<1x256x64xf32>
    tpu.vector_store %arg4[%c0_24, %c0_25, %c0_26], %33 {strides = array<i32>} : memref<1x256x64xf32, #tpu.memory_space<vmem>>, vector<1x256x64xf32>,
    return
  }
  func.func @transform_0(%arg0: i32) -> (i32, i32, i32, i32) {
    %c0_i32 = arith.constant 0 : i32
    %c0_i32_0 = arith.constant 0 : i32
    %c0_i32_1 = arith.constant 0 : i32
    %c0_i32_2 = arith.constant 0 : i32
    return %arg0, %c0_i32, %c0_i32_0, %c0_i32_1 : i32, i32, i32, i32
  }
  func.func @transform_1(%arg0: i32) -> (i32, i32) {
    %c0_i32 = arith.constant 0 : i32
    %c0_i32_0 = arith.constant 0 : i32
    %c0_i32_1 = arith.constant 0 : i32
    return %c0_i32, %c0_i32_0 : i32, i32
  }
  func.func @transform_2(%arg0: i32) -> (i32, i32) {
    %c0_i32 = arith.constant 0 : i32
    %c0_i32_0 = arith.constant 0 : i32
    %c0_i32_1 = arith.constant 0 : i32
    return %c0_i32, %c0_i32_0 : i32, i32
  }
  func.func @transform_3(%arg0: i32) -> (i32, i32, i32) {
    %c0_i32 = arith.constant 0 : i32
    %c0_i32_0 = arith.constant 0 : i32
    %c0_i32_1 = arith.constant 0 : i32
    return %arg0, %c0_i32, %c0_i32_0 : i32, i32, i32
  }
}

</mosaic_0001>

<bundles_post_ra>
// kernel: conv_affine_prelu.1
= control target key start
LH: loop header
LB: loop body
LE: loop exit
PB: predicated region body
PF: predicated region fallthrough
CT: control target
= control target key end

     0   :  { %8 = vsyncpa [#allocation4], 0  ;;  %s3880_s0 = inlined_call_operand.vmem [shape: f32[2,16,16,64], index: 0, kind: input, shape index: {}]   ;;  %s3881_s1 = inlined_call_operand.vmem [shape: bf16[192,192], index: 1, kind: input, shape index: {}]   ;;  %s3882_s2 = inlined_call_operand.vmem [shape: f32[3,64], index: 2, kind: input, shape index: {}]   ;;  %s3883_s3 = inlined_call_operand.hbm [shape: f32[2,256,64], index: 3, kind: output, shape index: {}]  }
   0x1   :  { %10 = vsyncpa [#allocation4 + $0x1], 0  ;;  %s2541_s12 = smov 0   ;;  %s2543_s13 = smov 0  }
   0x2   :  { %s2545_s14 = smov 0   ;;  %s2547_s15 = smov 0  }
   0x3 LB: > { %s2562_s16 = sadd.s32 4294967295, %s2514_s15   ;;  %s2149_s17 = sadd.s32 4294967294, %s2514_s15   ;;  %s2514_s15 = sphi %s2547_s15, %s4031_s15   ;;  %s2510_s14 = sphi %s2545_s14, %s4030_s14   ;;  %s2506_s13 = sphi %s2543_s13, %s4029_s13   ;;  %s2502_s12 = sphi %s2541_s12, %s4028_s12  }
   0x4   : > { %s2566_s18 = sadd.s32 1, %s2514_s15   ;;  %s91_s19 = sadd.s32 1, %s2510_s14 }
   0x5   : > { %s88_s20 = ssub.s32 %s2514_s15, %s2566_s18  ;;  %p101_p0 = scmp.ne.s32.totalorder %s2510_s14, %s2506_s13 }
   0x6   : > { %p89_p1 = scmp.eq.s32.totalorder %s88_s20, 0  ;;  %p102_p2 = scmp.eq.s32.totalorder %s2562_s16, 1 }
   0x7   : > { %p107_p3 = scmp.ne.s32.totalorder %s2506_s13, %s2502_s12  ;;  %p108_p4 = scmp.eq.s32.totalorder %s2149_s17, 1 }
   0x8   : > { %s2577_s21 = scalar_select %p89_p1, %s2510_s14, %s91_s19  }
   0x9   : > { %p2579_p5 = por %p102_p2, %p101_p0  ;;  %p2583_p6 = por %p108_p4, %p107_p3 }
   0xa   : > { %p2152_p7 = scmp.ge.s32.totalorder %s2514_s15, 1  ;;  %p140_p8 = scmp.lt.s32.totalorder %s2514_s15, 3 }
   0xc   : > { %p141_p9 = pnand %p2152_p7, %p140_p8 }
   0xe   : > { %144 = sbr.rel (%p141_p9) target bundleno = 556 (0x22c), region = 32 }
  0x13   : > { %p164_p10 = scmp.lt.s32.totalorder %s2562_s16, 1  ;;  %v2375_v0 = vld [vmem:[%s3881_s1 + $0x74] ss:$8 sps:$4 sm:$0xff]   ;;  %v2377_v1 = vld [vmem:[%s3881_s1 + $0x70] ss:$8 sps:$4 sm:$0xff]   ;;  %vm170_vm0 = vcmask 1043456  }
  0x14   : > { %1467 = vmatprep.subr.bf16.mxu0 %v2375_v0  ;;  %v2378_v2 = vld [vmem:[%s3881_s1 + $0x64] ss:$8 sps:$4 sm:$0xff]   ;;  %2308 = vmatprep.subr.bf16.mxu1 %v2375_v0  ;;  %v2380_v3 = vld [vmem:[%s3881_s1 + $0x60] ss:$8 sps:$4 sm:$0xff]   ;;  %v2381_v4 = vld [vmem:[%s3881_s1 + $0x54] ss:$8 sps:$4 sm:$0xff]  }
  0x15   : > { %s165_s28 = scalar_select %p164_p10, %s2562_s16, 1  ;;  %1468 = vmatpush1.bf16.msra.mxu0 %v2377_v1  ;;  %2320 = vmatpush1.bf16.msra.mxu1 %v2377_v1  ;;  %v2614_v5 = vld [vmem:[%s3881_s1 + $0x50] ss:$8 sps:$4 sm:$0xff]   ;;  %vm171_vm1 = vcmask 523268   ;;  %v2384_v18 = vld [vmem:[%s3881_s1 + $0x44] ss:$8 sps:$4 sm:$0xff]  }
  0x16   : > { %1469 = vmatprep.subr.bf16.mxu0 %v2378_v2  ;;  %2309 = vmatprep.subr.bf16.mxu1 %v2378_v2  ;;  %s2516_s25 = smov 64   ;;  %vm2647_vm2 = vmor %vm171_vm1, %vm170_vm0  ;;  %v2517_v28 = vmov 0   ;;  %v2386_v33 = vld [vmem:[%s3881_s1 + $0x40] ss:$8 sps:$4 sm:$0xff]   ;;  %vm1412_vm3 = vcmask 523264   ;;  %vm629_vm4 = vcmask 519168  }
  0x17   : > { %s2274_s6 = sshll.u32 %s165_s28, 8  ;;  %191 = vst.msk [vmem:[#allocation2 + $0x90] sm:$0xff] %vm2647_vm2, %v2517_v28  ;;  %173 = vst.msk [vmem:[#allocation2] sm:$0xff] %vm2647_vm2, %v2517_v28  ;;  %vm630_vm5 = vsmask.f32 7938  ;;  %vm793_vm14 = vcmask 1043968  }
  0x18   : > { %s2609_s11 = scalar_lea.vmem %s3880_s0, %s2274_s6  ;;  %174 = vst.msk [vmem:[#allocation2 + $0x8] sm:$0xff] %vm2647_vm2, %v2517_v28  ;;  %175 = vst.msk [vmem:[#allocation2 + $0x10] sm:$0xff] %vm2647_vm2, %v2517_v28  ;;  %vm826_vm6 = vsmask.f32 3328  ;;  %vm827_vm7 = vsmask.f32 7440 }
  0x19   : > { %v225_v6 = vld [vmem:[%s2609_s11 + $0x80] sm:$0xff]  ;;  %v226_v8 = vld [vmem:[%s2609_s11 + $0x88] sm:$0xff]  ;;  %v212_v13 = vld [vmem:[%s2609_s11 + $0x18] sm:$0xff]  ;;  %1470 = vmatpush1.bf16.msra.mxu0 %v2380_v3  ;;  %2321 = vmatpush1.bf16.msra.mxu1 %v2380_v3  ;;  %176 = vst.msk [vmem:[#allocation2 + $0x18] sm:$0xff] %vm2647_vm2, %v2517_v28  ;;  %vm337_vm11 = vsmask.f32 256 }
  0x1a   : > { %v209_v7 = vld [vmem:[%s2609_s11] sm:$0xff]  ;;  %v2619_v9 = vpack.c.bf16 %v225_v6, %v225_v6  ;;  %v2623_v11 = vpack.c.bf16 %v226_v8, %v226_v8  ;;  %v210_v12 = vld [vmem:[%s2609_s11 + $0x8] sm:$0xff]  ;;  %v211_v14 = vld [vmem:[%s2609_s11 + $0x10] sm:$0xff]  ;;  %v2630_v16 = vpack.c.bf16 %v212_v13, %v212_v13  ;;  %1471 = vmatprep.subr.bf16.mxu0 %v2381_v4  ;;  %2310 = vmatprep.subr.bf16.mxu1 %v2381_v4  ;;  %vm338_vm12 = vsmask.f32 4368  ;;  %s161_s29 = sand.u32 1, %s2506_s13  }
  0x1b   : > { %v2621_v10 = vpack.c.bf16 %v209_v7, %v209_v7  ;;  %v2628_v15 = vpack.c.bf16 %v210_v12, %v210_v12  ;;  %v2632_v17 = vpack.c.bf16 %v211_v14, %v211_v14  ;;  %177 = vst.msk [vmem:[#allocation2 + $0x20] sm:$0xff] %vm2647_vm2, %v2517_v28  ;;  %178 = vst.msk [vmem:[#allocation2 + $0x28] sm:$0xff] %vm2647_vm2, %v2517_v28  ;;  %v228_v54 = vld [vmem:[%s2609_s11 + $0x98] sm:$0xff]  ;;  %v227_v55 = vld [vmem:[%s2609_s11 + $0x90] sm:$0xff]  ;;  %s2153_s6 = sshll.u32 %s161_s29, 8  ;;  %s2307_s8 = sshll.u32 %s2562_s16, 12 }
  0x1c   : > { %729 = vrot.lane.b32.xlu1 %v2619_v9, %s2516_s25  ;;  %v469_v19 = vshrl.u32 %v2619_v9, 16  ;;  %v472_v20 = vshll.u32 %v2619_v9, 16  ;;  %v477_v24 = vshrl.u32 %v2623_v11, 16  ;;  %v480_v25 = vshll.u32 %v2623_v11, 16  ;;  %179 = vst.msk [vmem:[#allocation2 + $0x30] sm:$0xff] %vm2647_vm2, %v2517_v28  ;;  %180 = vst.msk [vmem:[#allocation2 + $0x38] sm:$0xff] %vm2647_vm2, %v2517_v28  ;;  %s3832_s19 = scalar_lea.hbm %s3883_s3, %s2307_s8 }
  0x1d   : > { %697 = vrot.lane.b32.xlu0 %v2621_v10, %s2516_s25  ;;  %v341_v21 = vshrl.u32 %v2621_v10, 16  ;;  %v344_v22 = vshll.u32 %v2621_v10, 16  ;;  %v349_v26 = vshrl.u32 %v2628_v15, 16  ;;  %v352_v27 = vshll.u32 %v2628_v15, 16  ;;  %181 = vst.msk [vmem:[#allocation2 + $0x40] sm:$0xff] %vm2647_vm2, %v2517_v28  ;;  %182 = vst.msk [vmem:[#allocation2 + $0x48] sm:$0xff] %vm2647_vm2, %v2517_v28  ;;  %1472 = vmatpush1.bf16.msra.mxu0 %v2614_v5 }
  0x1e   : > { %183 = vst.msk [vmem:[#allocation2 + $0x50] sm:$0xff] %vm2647_vm2, %v2517_v28  ;;  %184 = vst.msk [vmem:[#allocation2 + $0x58] sm:$0xff] %vm2647_vm2, %v2517_v28  ;;  %v2727_v29 = vrot.slane %v469_v19, 7  ;;  %v901_v30 = vrot.slane %v469_v19, 4  ;;  %v902_v31 = vrot.slane %v472_v20, 5  ;;  %2322 = vmatpush1.bf16.msra.mxu1 %v2614_v5  ;;  %v479_v36 = vrot.slane %v477_v24, 7  ;;  %1473 = vmatprep.subr.bf16.mxu0 %v2384_v18 }
  0x1f   : > { %185 = vst.msk [vmem:[#allocation2 + $0x60] sm:$0xff] %vm2647_vm2, %v2517_v28  ;;  %186 = vst.msk [vmem:[#allocation2 + $0x68] sm:$0xff] %vm2647_vm2, %v2517_v28  ;;  %v2729_v32 = vrot.slane %v341_v21, 7  ;;  %v829_v34 = vrot.slane %v341_v21, 4  ;;  %v830_v35 = vrot.slane %v344_v22, 5  ;;  %v2736_v37 = vrot.slane %v480_v25, 5  ;;  %2311 = vmatprep.subr.bf16.mxu1 %v2384_v18 }
  0x20   : > { %187 = vst.msk [vmem:[#allocation2 + $0x70] sm:$0xff] %vm2647_vm2, %v2517_v28  ;;  %188 = vst.msk [vmem:[#allocation2 + $0x78] sm:$0xff] %vm2647_vm2, %v2517_v28  ;;  %v2739_v38 = vor.u32 %v472_v20, %v2727_v29  ;;  %v903_v39 = vor.u32 %v902_v31, %v901_v30  ;;  %v907_v41 = vrot.slane %v477_v24, 4  ;;  %731 = vrot.lane.b32.xlu1 %v2623_v11, %s2516_s25  ;;  %v351_v44 = vrot.slane %v349_v26, 7  ;;  %v214_v60 = vld [vmem:[%s2609_s11 + $0x28] sm:$0xff]  ;;  %v216_v23 = vld [vmem:[%s2609_s11 + $0x38] sm:$0xff] }
  0x21   : > { %189 = vst.msk [vmem:[#allocation2 + $0x80] sm:$0xff] %vm2647_vm2, %v2517_v28  ;;  %190 = vst.msk [vmem:[#allocation2 + $0x88] sm:$0xff] %vm2647_vm2, %v2517_v28  ;;  %v2742_v40 = vor.u32 %v344_v22, %v2729_v32  ;;  %699 = vrot.lane.b32.xlu0 %v2628_v15, %s2516_s25  ;;  %v831_v42 = vor.u32 %v830_v35, %v829_v34  ;;  %v2748_v43 = vor.u32 %v480_v25, %v479_v36  ;;  %v2387_v5 = vld [vmem:[%s3881_s1 + $0x34] ss:$8 sps:$4 sm:$0xff]   ;;  %v2389_v6 = vld [vmem:[%s3881_s1 + $0x30] ss:$8 sps:$4 sm:$0xff]  }
  0x22   : > { %192 = vst.msk [vmem:[#allocation2 + $0x98] sm:$0xff] %vm2647_vm2, %v2517_v28  ;;  %193 = vst.msk [vmem:[#allocation2 + $0xa0] sm:$0xff] %vm2647_vm2, %v2517_v28  ;;  %v2754_v45 = vrot.slane %v352_v27, 5  ;;  %v2756_v46 = vrot.slane %v903_v39, 4  ;;  %v908_v47 = vor.u32 %v907_v41, %v2736_v37  ;;  %v835_v48 = vrot.slane %v349_v26, 4  ;;  %1474 = vmatpush1.bf16.msra.mxu0 %v2386_v33  ;;  %2323 = vmatpush1.bf16.msra.mxu1 %v2386_v33  ;;  %v230_v21 = vld [vmem:[%s2609_s11 + $0xa8] sm:$0xff] }
  0x23   : > { %194 = vst.msk [vmem:[#allocation2 + $0xa8] sm:$0xff] %vm2647_vm2, %v2517_v28  ;;  %195 = vst.msk [vmem:[#allocation2 + $0xb0] sm:$0xff] %vm2647_vm2, %v2517_v28  ;;  %v365_v49 = vshrl.u32 %v2630_v16, 16  ;;  %v2762_v50 = vrot.slane %v831_v42, 4  ;;  %v2766_v51 = vor.u32 %v352_v27, %v351_v44  ;;  %v368_v52 = vshll.u32 %v2630_v16, 16  ;;  %v229_v22 = vld [vmem:[%s2609_s11 + $0xa0] sm:$0xff]  ;;  %1475 = vmatprep.subr.bf16.mxu0 %v2387_v5  ;;  %2312 = vmatprep.subr.bf16.mxu1 %v2387_v5 }
  0x24   : > { %196 = vst.msk [vmem:[#allocation2 + $0xb8] sm:$0xff] %vm2647_vm2, %v2517_v28  ;;  %197 = vst.msk [vmem:[#allocation2 + $0xc0] sm:$0xff] %vm2647_vm2, %v2517_v28  ;;  %v357_v53 = vshrl.u32 %v2632_v17, 16  ;;  %v2772_v56 = vrot.slane %v908_v47, 4  ;;  %v836_v57 = vor.u32 %v835_v48, %v2754_v45  ;;  %703 = vrot.lane.b32.xlu1 %v2630_v16, %s2516_s25  ;;  %v360_v63 = vshll.u32 %v2632_v17, 16  ;;  %v213_v16 = vld [vmem:[%s2609_s11 + $0x20] sm:$0xff] }
  0x25   : > { %198 = vst.msk [vmem:[#allocation2 + $0xc8] sm:$0xff] %vm2647_vm2, %v2517_v28  ;;  %199 = vst.msk [vmem:[#allocation2 + $0xd0] sm:$0xff] %vm2647_vm2, %v2517_v28  ;;  %v367_v58 = vrot.slane %v365_v49, 7  ;;  %v844_v59 = vrot.slane %v365_v49, 4  ;;  %701 = vrot.lane.b32.xlu0 %v2632_v17, %s2516_s25  ;;  %v2780_v61 = vrot.slane %v368_v52, 5  ;;  %v2294_v3 = vpack.c.bf16 %v228_v54, %v228_v54  ;;  %s3620_s7 = scalar_lea.vmem [#allocation3], %s2153_s6 }
  0x26   : > { %200 = vst.msk [vmem:[#allocation2 + $0xd8] sm:$0xff] %vm2647_vm2, %v2517_v28  ;;  %201 = vst.msk [vmem:[#allocation2 + $0xe0] sm:$0xff] %vm2647_vm2, %v2517_v28  ;;  %v2782_v62 = vrot.slane %v357_v53, 7  ;;  %v838_v0 = vrot.slane %v357_v53, 4  ;;  %v2785_v1 = vrot.slane %v836_v57, 4  ;;  %v2293_v4 = vpack.c.bf16 %v227_v55, %v227_v55  ;;  %1476 = vmatpush1.bf16.msra.mxu0 %v2389_v6  ;;  %2324 = vmatpush1.bf16.msra.mxu1 %v2389_v6  ;;  %s2087_s9 = sshll.u32 %s3620_s7, 4  ;;  %s3834_s9 = int_to_ptr.vmem [resolvable:$true] %s2087_s9 }
  0x27   : > { %202 = vst.msk [vmem:[#allocation2 + $0xe8] sm:$0xff] %vm2647_vm2, %v2517_v28  ;;  %203 = vst.msk [vmem:[#allocation2 + $0xf0] sm:$0xff] %vm2647_vm2, %v2517_v28  ;;  %v2787_v2 = vor.u32 %v368_v52, %v367_v58  ;;  %v845_v7 = vor.u32 %v844_v59, %v2780_v61  ;;  %v839_v9 = vrot.slane %v360_v63, 5  ;;  %v2280_v10 = vpack.c.bf16 %v214_v60, %v214_v60  ;;  %v2390_v11 = vld [vmem:[%s3881_s1 + $0x24] ss:$8 sps:$4 sm:$0xff]   ;;  %s3840_s16 = scalar_lea.sflag [#allocation4], %s161_s29 }
  0x28   : > { %204 = vst.msk [vmem:[#allocation2 + $0xf8] sm:$0xff] %vm2647_vm2, %v2517_v28  ;;  %205 = vst.msk [vmem:[#allocation2 + $0x100] sm:$0xff] %vm2647_vm2, %v2517_v28  ;;  %v2797_v8 = vor.u32 %v360_v63, %v2782_v62  ;;  %v493_v12 = vshrl.u32 %v2294_v3, 16  ;;  %v496_v13 = vshll.u32 %v2294_v3, 16  ;;  %735 = vrot.lane.b32.xlu1 %v2294_v3, %s2516_s25  ;;  %v485_v14 = vshrl.u32 %v2293_v4, 16  ;;  %1477 = vmatprep.subr.bf16.mxu0 %v2390_v11  ;;  %s2454_s20 = scalar_lea.vmem %s3834_s9, 4096 }
  0x29   : > { %206 = vst.msk [vmem:[#allocation2 + $0x108] sm:$0xff] %vm2647_vm2, %v2517_v28  ;;  %207 = vst.msk [vmem:[#allocation2 + $0x110] sm:$0xff] %vm2647_vm2, %v2517_v28  ;;  %v488_v15 = vshll.u32 %v2293_v4, 16  ;;  %733 = vrot.lane.b32.xlu0 %v2293_v4, %s2516_s25  ;;  %v2805_v17 = vrot.slane %v845_v7, 4  ;;  %v840_v18 = vor.u32 %v839_v9, %v838_v0  ;;  %v381_v19 = vshrl.u32 %v2280_v10, 16  ;;  %2313 = vmatprep.subr.bf16.mxu1 %v2390_v11  ;;  %v215_v7 = vld [vmem:[%s2609_s11 + $0x30] sm:$0xff]  ;;  %p2455_p11 = scmp.ne.s32.totalorder %s3834_s9, %s2454_s20 }
  0x2a   : > { %208 = vst.msk [vmem:[#allocation2 + $0x118] sm:$0xff] %vm2647_vm2, %v2517_v28  ;;  %v384_v20 = vshll.u32 %v2280_v10, 16  ;;  %v2392_v24 = vld [vmem:[%s3881_s1 + $0x20] ss:$8 sps:$4 sm:$0xff]   ;;  %v495_v25 = vrot.slane %v493_v12, 7  ;;  %v2813_v26 = vrot.slane %v496_v13, 5  ;;  %v2279_v49 = vpack.c.bf16 %v213_v16, %v213_v16  ;;  %vm3065_vm8 = vmand %vm629_vm4, %vm630_vm5 }
  0x2b   : > { %v916_v27 = vrot.slane %v493_v12, 4  ;;  %v2815_v28 = vrot.slane %v485_v14, 7  ;;  %v2393_v30 = vld [vmem:[%s3881_s1 + $0x14] ss:$8 sps:$4 sm:$0xff]   ;;  %v2820_v31 = vrot.slane %v840_v18, 4  ;;  %v910_v33 = vrot.slane %v485_v14, 4  ;;  %1478 = vmatpush1.bf16.msra.mxu0 %v2392_v24  ;;  %2325 = vmatpush1.bf16.msra.mxu1 %v2392_v24  ;;  %vm3073_vm9 = vmor %vm826_vm6, %vm827_vm7  ;;  %p2456_p12 = pnand %p2455_p11, %p2579_p5 }
  0x2c   : > { %v911_v34 = vrot.slane %v488_v15, 5  ;;  %v383_v35 = vrot.slane %v381_v19, 7  ;;  %v2822_v36 = vor.u32 %v496_v13, %v495_v25  ;;  %v2828_v42 = vrot.slane %v384_v20, 5  ;;  %707 = vrot.lane.b32.xlu1 %v2280_v10, %s2516_s25  ;;  %v2395_v57 = vld [vmem:[%s3881_s1 + $0x10] ss:$8 sps:$4 sm:$0xff]   ;;  %1479 = vmatprep.subr.bf16.mxu0 %v2393_v30  ;;  %vm3095_vm10 = vmand %vm629_vm4, %vm826_vm6  ;;  %s2518_s24 = smov [#allocation3]  }
  0x2d   : > { %v917_v39 = vor.u32 %v916_v27, %v2813_v26  ;;  %v2826_v41 = vor.u32 %v488_v15, %v2815_v28  ;;  %v853_v48 = vrot.slane %v381_v19, 4  ;;  %v2296_v53 = vpack.c.bf16 %v230_v21, %v230_v21  ;;  %v2396_v58 = vld [vmem:[%s3881_s1 + $0x4] ss:$8 sps:$4 sm:$0xff]   ;;  %705 = vrot.lane.b32.xlu0 %v2279_v49, %s2516_s25  ;;  %2314 = vmatprep.subr.bf16.mxu1 %v2393_v30  ;;  %v2398_v13 = vld [vmem:[%s3881_s1] ss:$8 sps:$4 sm:$0xff]   ;;  %vm3111_vm13 = vmor %vm337_vm11, %vm338_vm12  ;;  %p2457_p13 = pneg %p2456_p12  ;;  %s2458_s26 = sshll.u32 %s2518_s24, 4  ;;  %s2459_s26 = int_to_ptr.vmem [resolvable:$false] %s2458_s26 }
  0x2e   : > { %v912_v44 = vor.u32 %v911_v34, %v910_v33  ;;  %v2831_v47 = vor.u32 %v384_v20, %v383_v35  ;;  %v2295_v54 = vpack.c.bf16 %v229_v22, %v229_v22  ;;  %v2835_v55 = vpack.c.bf16 %v216_v23, %v216_v23  ;;  %v232_v23 = vld [vmem:[%s2609_s11 + $0xb8] sm:$0xff]  ;;  %s2460_s27 = scalar_lea.vmem %s2459_s26, 8192  ;;  %p2461_p0 = scmp.lt.s32.totalorder %s3834_s9, %s2459_s26 }
  0x2f   : > { %v2833_v52 = vrot.slane %v917_v39, 4  ;;  %v854_v60 = vor.u32 %v853_v48, %v2828_v42  ;;  %v373_v63 = vshrl.u32 %v2279_v49, 16  ;;  %v376_v0 = vshll.u32 %v2279_v49, 16  ;;  %1480 = vmatpush1.bf16.msra.mxu0 %v2395_v57  ;;  %2326 = vmatpush1.bf16.msra.mxu1 %v2395_v57  ;;  %v2399_v24 = vld [vmem:[%s3881_s1 + $0xb4] ss:$8 sps:$4 sm:$0xff]   ;;  %p2462_p1 = scmp.lt.s32.totalorder %s2460_s27, %s2454_s20 }
  0x30   : > { %v2843_v59 = vrot.slane %v912_v44, 4  ;;  %v509_v3 = vshrl.u32 %v2296_v53, 16  ;;  %v512_v4 = vshll.u32 %v2296_v53, 16  ;;  %739 = vrot.lane.b32.xlu1 %v2296_v53, %s2516_s25  ;;  %v501_v5 = vshrl.u32 %v2295_v54, 16  ;;  %1481 = vmatprep.subr.bf16.mxu0 %v2396_v58  ;;  %v231_v48 = vld [vmem:[%s2609_s11 + $0xb0] sm:$0xff] }
  0x31   : > { %v504_v6 = vshll.u32 %v2295_v54, 16  ;;  %v2849_v9 = vrot.slane %v854_v60, 4  ;;  %v2851_v10 = vrot.slane %v373_v63, 7  ;;  %v847_v11 = vrot.slane %v373_v63, 4  ;;  %737 = vrot.lane.b32.xlu0 %v2295_v54, %s2516_s25  ;;  %2315 = vmatprep.subr.bf16.mxu1 %v2396_v58  ;;  %v2413_v49 = vld [vmem:[#allocation2 + $0x4] ss:$8 sps:$4 sm:$0xff]   ;;  %p2463_p2 = por %p2462_p1, %p2461_p0 }
  0x32   : > { %v848_v12 = vrot.slane %v376_v0, 5  ;;  %v511_v14 = vrot.slane %v509_v3, 7  ;;  %v2856_v15 = vrot.slane %v512_v4, 5  ;;  %v925_v16 = vrot.slane %v509_v3, 4  ;;  %v2401_v63 = vld [vmem:[%s3881_s1 + $0xb0] ss:$8 sps:$4 sm:$0xff]   ;;  %2248 = vmatprep.mubr.msk.bf16.mxu0 %vm1412_vm3, %v2413_v49 }
  0x33   : > { %v2858_v18 = vrot.slane %v501_v5, 7  ;;  %v2861_v19 = vor.u32 %v376_v0, %v2851_v10  ;;  %v919_v21 = vrot.slane %v501_v5, 4  ;;  %v920_v22 = vrot.slane %v504_v6, 5  ;;  %1482 = vmatpush1.bf16.msra.mxu0 %v2398_v13  ;;  %2327 = vmatpush1.bf16.msra.mxu1 %v2398_v13  ;;  %v234_v49 = vld [vmem:[%s2609_s11 + $0xc8] sm:$0xff]  ;;  %p2464_p3 = pnand %p2463_p2, %p2457_p13 }
  0x34   : > { %v849_v20 = vor.u32 %v848_v12, %v847_v11  ;;  %v2868_v25 = vor.u32 %v512_v4, %v511_v14  ;;  %v926_v27 = vor.u32 %v925_v16, %v2856_v15  ;;  %v397_v33 = vshrl.u32 %v2835_v55, 16  ;;  %711 = vrot.lane.b32.xlu1 %v2835_v55, %s2516_s25  ;;  %1491 = vmatprep.subr.bf16.mxu0 %v2399_v24  ;;  %v2402_v4 = vld [vmem:[%s3881_s1 + $0xa4] ss:$8 sps:$4 sm:$0xff]  }
  0x35   : > { %v2872_v30 = vor.u32 %v504_v6, %v2858_v18  ;;  %v921_v35 = vor.u32 %v920_v22, %v919_v21  ;;  %v400_v39 = vshll.u32 %v2835_v55, 16  ;;  %v2281_v44 = vpack.c.bf16 %v215_v7, %v215_v7  ;;  %2316 = vmatprep.subr.bf16.mxu1 %v2399_v24  ;;  %v217_v21 = vld [vmem:[%s2609_s11 + $0x40] sm:$0xff] }
  0x36   : > { %3908 = vst [vmem:[#allocation6_spill] sm:$0xff] %v2868_v25  ;;  %v2877_v34 = vrot.slane %v849_v20, 4  ;;  %v2881_v53 = vrot.slane %v926_v27, 4  ;;  %v399_v54 = vrot.slane %v397_v33, 7  ;;  %v862_v57 = vrot.slane %v397_v33, 4  ;;  %v218_v20 = vld [vmem:[%s2609_s11 + $0x48] sm:$0xff] }
  0x37   : > { %v2298_v60 = vpack.c.bf16 %v232_v23, %v232_v23  ;;  %v2886_v58 = vrot.slane %v921_v35, 4  ;;  %v2888_v0 = vrot.slane %v400_v39, 5  ;;  %v389_v55 = vshrl.u32 %v2281_v44, 16  ;;  %709 = vrot.lane.b32.xlu0 %v2281_v44, %s2516_s25  ;;  %1492 = vmatpush2.bf16.msra.mxu0 %v2401_v63  ;;  %v2404_v24 = vld [vmem:[%s3881_s1 + $0xa0] ss:$8 sps:$4 sm:$0xff]  }
  0x38   : > { %v392_v3 = vshll.u32 %v2281_v44, 16  ;;  %v2894_v5 = vor.u32 %v400_v39, %v399_v54  ;;  %v2297_v11 = vpack.c.bf16 %v231_v48, %v231_v48  ;;  %2328 = vmatpush2.bf16.msra.mxu1 %v2401_v63  ;;  %v233_v54 = vld [vmem:[%s2609_s11 + $0xc0] sm:$0xff]  ;;  %1493 = vmatprep.subr.bf16.mxu0 %v2402_v4  ;;  %v2405_v63 = vld [vmem:[%s3881_s1 + $0x94] ss:$8 sps:$4 sm:$0xff]  }
  0x39   : > { %3909 = vst [vmem:[#allocation7_spill] sm:$0xff] %v2888_v0  ;;  %v525_v6 = vshrl.u32 %v2298_v60, 16  ;;  %v528_v7 = vshll.u32 %v2298_v60, 16  ;;  %743 = vrot.lane.b32.xlu1 %v2298_v60, %s2516_s25  ;;  %v863_v12 = vor.u32 %v862_v57, %v2888_v0  ;;  %v2898_v13 = vrot.slane %v389_v55, 7  ;;  %2317 = vmatprep.subr.bf16.mxu1 %v2402_v4 }
  0x3a   : > { %3910 = vst [vmem:[#allocation8_spill] sm:$0xff] %v2894_v5  ;;  %v856_v14 = vrot.slane %v389_v55, 4  ;;  %v857_v16 = vrot.slane %v392_v3, 5  ;;  %v517_v33 = vshrl.u32 %v2297_v11, 16  ;;  %v520_v48 = vshll.u32 %v2297_v11, 16 }
  0x3b   : > { %v527_v22 = vrot.slane %v525_v6, 7  ;;  %v2903_v23 = vrot.slane %v528_v7, 5  ;;  %v934_v27 = vrot.slane %v525_v6, 4  ;;  %v2908_v35 = vrot.slane %v863_v12, 4  ;;  %741 = vrot.lane.b32.xlu0 %v2297_v11, %s2516_s25  ;;  %1494 = vmatpush2.bf16.msra.mxu0 %v2404_v24 }
  0x3c   : > { %v2911_v39 = vor.u32 %v392_v3, %v2898_v13  ;;  %v858_v44 = vor.u32 %v857_v16, %v856_v14  ;;  %v2919_v55 = vrot.slane %v517_v33, 7  ;;  %v928_v6 = vrot.slane %v517_v33, 4  ;;  %v2407_v33 = vld [vmem:[%s3881_s1 + $0x90] ss:$8 sps:$4 sm:$0xff]   ;;  %2329 = vmatpush2.bf16.msra.mxu1 %v2404_v24  ;;  %1495 = vmatprep.subr.bf16.mxu0 %v2405_v63 }
  0x3d   : > { %3911 = vst [vmem:[#allocation9_spill] sm:$0xff] %v2903_v23  ;;  %3912 = vst [vmem:[#allocation10_spill] sm:$0xff] %v2908_v35  ;;  %v2916_v57 = vor.u32 %v528_v7, %v527_v22  ;;  %v935_v60 = vor.u32 %v934_v27, %v2903_v23  ;;  %v929_v12 = vrot.slane %v520_v48, 5  ;;  %v2284_v14 = vpack.c.bf16 %v218_v20, %v218_v20  ;;  %v220_v23 = vld [vmem:[%s2609_s11 + $0x58] sm:$0xff] }
  0x3e   : > { %3913 = vst [vmem:[#allocation11_spill] sm:$0xff] %v2911_v39  ;;  %3915 = vst [vmem:[#allocation13_spill] sm:$0xff] %v2919_v55  ;;  %v2924_v3 = vrot.slane %v858_v44, 4  ;;  %v2283_v11 = vpack.c.bf16 %v217_v21, %v217_v21  ;;  %v2929_v7 = vor.u32 %v520_v48, %v2919_v55  ;;  %v2300_v22 = vpack.c.bf16 %v234_v49, %v234_v49 }
  0x3f   : > { %3914 = vst [vmem:[#allocation12_spill] sm:$0xff] %v2916_v57  ;;  %v2926_v16 = vrot.slane %v935_v60, 4  ;;  %v2299_v27 = vpack.c.bf16 %v233_v54, %v233_v54  ;;  %v930_v57 = vor.u32 %v929_v12, %v928_v6  ;;  %v413_v4 = vshrl.u32 %v2284_v14, 16  ;;  %715 = vrot.lane.b32.xlu1 %v2284_v14, %s2516_s25  ;;  %v2408_v54 = vld [vmem:[%s3881_s1 + $0x84] ss:$8 sps:$4 sm:$0xff]   ;;  %2318 = vmatprep.subr.bf16.mxu1 %v2405_v63 }
  0x40   : > { %3916 = vst [vmem:[#allocation14_spill] sm:$0xff] %v2924_v3  ;;  %3918 = vst [vmem:[#allocation16_spill] sm:$0xff] %v2929_v7  ;;  %v416_v44 = vshll.u32 %v2284_v14, 16  ;;  %v405_v20 = vshrl.u32 %v2283_v11, 16  ;;  %713 = vrot.lane.b32.xlu0 %v2283_v11, %s2516_s25  ;;  %v408_v21 = vshll.u32 %v2283_v11, 16  ;;  %v541_v48 = vshrl.u32 %v2300_v22, 16  ;;  %1496 = vmatpush2.bf16.msra.mxu0 %v2407_v33 }
  0x41   : > { %3917 = vst [vmem:[#allocation15_spill] sm:$0xff] %v2926_v16  ;;  %v544_v60 = vshll.u32 %v2300_v22, 16  ;;  %v533_v49 = vshrl.u32 %v2299_v27, 16  ;;  %v2939_v24 = vrot.slane %v930_v57, 4  ;;  %v415_v6 = vrot.slane %v413_v4, 7  ;;  %2330 = vmatpush2.bf16.msra.mxu1 %v2407_v33  ;;  %v236_v3 = vld [vmem:[%s2609_s11 + $0xd8] sm:$0xff]  ;;  %1497 = vmatprep.subr.bf16.mxu0 %v2408_v54 }
  0x42   : > { %v2941_v12 = vrot.slane %v416_v44, 5  ;;  %v871_v14 = vrot.slane %v413_v4, 4  ;;  %v2944_v7 = vrot.slane %v405_v20, 7  ;;  %v865_v11 = vrot.slane %v405_v20, 4  ;;  %v2410_v63 = vld [vmem:[%s3881_s1 + $0x80] ss:$8 sps:$4 sm:$0xff]   ;;  %2319 = vmatprep.subr.bf16.mxu1 %v2408_v54 }
  0x43   : > { %3919 = vst [vmem:[#allocation17_spill] sm:$0xff] %v2939_v24  ;;  %v866_v5 = vrot.slane %v408_v21, 5  ;;  %v543_v16 = vrot.slane %v541_v48, 7  ;;  %v2949_v57 = vor.u32 %v416_v44, %v415_v6  ;;  %v2952_v55 = vrot.slane %v544_v60, 5  ;;  %747 = vrot.lane.b32.xlu1 %v2300_v22, %s2516_s25  ;;  %v219_v20 = vld [vmem:[%s2609_s11 + $0x50] sm:$0xff] }
  0x44   : > { %3920 = vst [vmem:[#allocation18_spill] sm:$0xff] %v2941_v12  ;;  %v872_v24 = vor.u32 %v871_v14, %v2941_v12  ;;  %v943_v4 = vrot.slane %v541_v48, 4  ;;  %745 = vrot.lane.b32.xlu0 %v2299_v27, %s2516_s25  ;;  %v2959_v0 = vor.u32 %v408_v21, %v2944_v7  ;;  %v2963_v33 = vrot.slane %v533_v49, 7  ;;  %v235_v44 = vld [vmem:[%s2609_s11 + $0xd0] sm:$0xff]  ;;  %1498 = vmatpush2.bf16.msra.mxu0 %v2410_v63 }
  0x45   : > { %3921 = vst [vmem:[#allocation19_spill] sm:$0xff] %v2949_v57  ;;  %3922 = vst [vmem:[#allocation20_spill] sm:$0xff] %v2952_v55  ;;  %v867_v25 = vor.u32 %v866_v5, %v865_v11  ;;  %v2961_v39 = vor.u32 %v544_v60, %v543_v16  ;;  %v536_v22 = vshll.u32 %v2299_v27, 16  ;;  %v937_v14 = vrot.slane %v533_v49, 4  ;;  %v2411_v57 = vld [vmem:[#allocation2] ss:$8 sps:$4 sm:$0xff]   ;;  %2331 = vmatpush2.bf16.msra.mxu1 %v2410_v63 }
  0x46   : > { %3923 = vst [vmem:[#allocation21_spill] sm:$0xff] %v2959_v0  ;;  %3925 = vst [vmem:[#allocation23_spill] sm:$0xff] %v2963_v33  ;;  %v2966_v6 = vrot.slane %v872_v24, 4  ;;  %v944_v48 = vor.u32 %v943_v4, %v2952_v55  ;;  %v2286_v35 = vpack.c.bf16 %v220_v23, %v220_v23  ;;  %v2285_v21 = vpack.c.bf16 %v219_v20, %v219_v20 }
  0x47   : > { %3924 = vst [vmem:[#allocation22_spill] sm:$0xff] %v2961_v39  ;;  %v2969_v12 = vrot.slane %v867_v25, 4  ;;  %v2302_v0 = vpack.c.bf16 %v236_v3, %v236_v3  ;;  %v2974_v16 = vor.u32 %v536_v22, %v2963_v33  ;;  %v938_v60 = vrot.slane %v536_v22, 5  ;;  %1500 = vmatmul.mubr.bf16.vlgmr.msra.gmra.mxu0 %v2411_v57 }
  0x48   : > { %v2971_v5 = vrot.slane %v944_v48, 4  ;;  %v2301_v54 = vpack.c.bf16 %v235_v44, %v235_v44  ;;  %v429_v24 = vshrl.u32 %v2286_v35, 16  ;;  %v432_v11 = vshll.u32 %v2286_v35, 16  ;;  %719 = vrot.lane.b32.xlu1 %v2286_v35, %s2516_s25  ;;  %717 = vrot.lane.b32.xlu0 %v2285_v21, %s2516_s25 }
  0x49   : > { %3926 = vst [vmem:[#allocation24_spill] sm:$0xff] %v2969_v12  ;;  %3928 = vst [vmem:[#allocation26_spill] sm:$0xff] %v2974_v16  ;;  %v421_v27 = vshrl.u32 %v2285_v21, 16  ;;  %v424_v25 = vshll.u32 %v2285_v21, 16  ;;  %v939_v23 = vor.u32 %v938_v60, %v937_v14  ;;  %v557_v3 = vshrl.u32 %v2302_v0, 16  ;;  %v222_v16 = vld [vmem:[%s2609_s11 + $0x68] sm:$0xff] }
  0x4a   : > { %3927 = vst [vmem:[#allocation25_spill] sm:$0xff] %v2971_v5  ;;  %v560_v49 = vshll.u32 %v2302_v0, 16  ;;  %v549_v63 = vshrl.u32 %v2301_v54, 16  ;;  %v431_v4 = vrot.slane %v429_v24, 7  ;;  %v2978_v20 = vrot.slane %v432_v11, 5 }
  0x4b   : > { %v880_v44 = vrot.slane %v429_v24, 4  ;;  %v2980_v48 = vrot.slane %v421_v27, 7  ;;  %v2982_v22 = vrot.slane %v939_v23, 4  ;;  %v874_v35 = vrot.slane %v421_v27, 4  ;;  %v221_v24 = vld [vmem:[%s2609_s11 + $0x60] sm:$0xff]  ;;  %v238_v23 = vld [vmem:[%s2609_s11 + $0xe8] sm:$0xff] }
  0x4c   : > { %3929 = vst [vmem:[#allocation27_spill] sm:$0xff] %v2978_v20  ;;  %v875_v39 = vrot.slane %v424_v25, 5  ;;  %v559_v55 = vrot.slane %v557_v3, 7  ;;  %v2985_v21 = vor.u32 %v432_v11, %v431_v4  ;;  %v2991_v60 = vrot.slane %v560_v49, 5  ;;  %751 = vrot.lane.b32.xlu1 %v2302_v0, %s2516_s25  ;;  %749 = vrot.lane.b32.xlu0 %v2301_v54, %s2516_s25 }
  0x4d   : > { %3930 = vst [vmem:[#allocation28_spill] sm:$0xff] %v2980_v48  ;;  %3931 = vst [vmem:[#allocation29_spill] sm:$0xff] %v2982_v22  ;;  %v881_v14 = vor.u32 %v880_v44, %v2978_v20  ;;  %v2989_v57 = vor.u32 %v424_v25, %v2980_v48  ;;  %v952_v5 = vrot.slane %v557_v3, 4  ;;  %v2999_v33 = vrot.slane %v549_v63, 7 }
  0x4e   : > { %3932 = vst [vmem:[#allocation30_spill] sm:$0xff] %v2985_v21  ;;  %3934 = vst [vmem:[#allocation32_spill] sm:$0xff] %v2991_v60  ;;  %v876_v22 = vor.u32 %v875_v39, %v874_v35  ;;  %v2997_v27 = vor.u32 %v560_v49, %v559_v55  ;;  %v552_v4 = vshll.u32 %v2301_v54, 16  ;;  %v946_v44 = vrot.slane %v549_v63, 4 }
  0x4f   : > { %3933 = vst [vmem:[#allocation31_spill] sm:$0xff] %v2989_v57  ;;  %3936 = vst [vmem:[#allocation34_spill] sm:$0xff] %v2999_v33  ;;  %v3001_v11 = vrot.slane %v881_v14, 4  ;;  %v2288_v25 = vpack.c.bf16 %v222_v16, %v222_v16  ;;  %v953_v20 = vor.u32 %v952_v5, %v2991_v60  ;;  %v2287_v0 = vpack.c.bf16 %v221_v24, %v221_v24  ;;  %v237_v24 = vld [vmem:[%s2609_s11 + $0xe0] sm:$0xff]  ;;  %v223_v60 = vld [vmem:[%s2609_s11 + $0x70] sm:$0xff] }
  0x50   : > { %3935 = vst [vmem:[#allocation33_spill] sm:$0xff] %v2997_v27  ;;  %v3003_v21 = vrot.slane %v876_v22, 4  ;;  %v2304_v57 = vpack.c.bf16 %v238_v23, %v238_v23  ;;  %v3007_v48 = vor.u32 %v552_v4, %v2999_v33  ;;  %v947_v39 = vrot.slane %v552_v4, 5  ;;  %v224_v27 = vld [vmem:[%s2609_s11 + $0x78] sm:$0xff] }
  0x51   : > { %3937 = vst [vmem:[#allocation35_spill] sm:$0xff] %v3001_v11  ;;  %v445_v55 = vshrl.u32 %v2288_v25, 16  ;;  %v448_v3 = vshll.u32 %v2288_v25, 16  ;;  %723 = vrot.lane.b32.xlu1 %v2288_v25, %s2516_s25  ;;  %v3010_v49 = vrot.slane %v953_v20, 4  ;;  %v437_v54 = vshrl.u32 %v2287_v0, 16  ;;  %721 = vrot.lane.b32.xlu0 %v2287_v0, %s2516_s25 }
  0x52   : > { %3938 = vst [vmem:[#allocation36_spill] sm:$0xff] %v3003_v21  ;;  %3939 = vst [vmem:[#allocation37_spill] sm:$0xff] %v3007_v48  ;;  %v440_v16 = vshll.u32 %v2287_v0, 16  ;;  %v573_v63 = vshrl.u32 %v2304_v57, 16  ;;  %v948_v5 = vor.u32 %v947_v39, %v946_v44  ;;  %v2303_v33 = vpack.c.bf16 %v237_v24, %v237_v24  ;;  %v240_v21 = vld [vmem:[%s2609_s11 + $0xf8] sm:$0xff] }
  0x53   : > { %3940 = vst [vmem:[#allocation38_spill] sm:$0xff] %v3010_v49  ;;  %v447_v22 = vrot.slane %v445_v55, 7  ;;  %v3013_v35 = vrot.slane %v448_v3, 5  ;;  %v889_v14 = vrot.slane %v445_v55, 4  ;;  %v3016_v23 = vrot.slane %v437_v54, 7 }
  0x54   : > { %v883_v4 = vrot.slane %v437_v54, 4  ;;  %v884_v20 = vrot.slane %v440_v16, 5  ;;  %v575_v25 = vrot.slane %v573_v63, 7  ;;  %v3019_v0 = vrot.slane %v948_v5, 4 }
  0x55   : > { %3941 = vst [vmem:[#allocation39_spill] sm:$0xff] %v3013_v35  ;;  %v3021_v44 = vor.u32 %v448_v3, %v447_v22  ;;  %v890_v39 = vor.u32 %v889_v14, %v3013_v35  ;;  %v576_v55 = vshll.u32 %v2304_v57, 16  ;;  %755 = vrot.lane.b32.xlu1 %v2304_v57, %s2516_s25  ;;  %v3027_v48 = vor.u32 %v440_v16, %v3016_v23  ;;  %v665_v35 = vld [vmem:[#allocation2 + $0x90] sm:$0xf] }
  0x56   : > { %v885_v54 = vor.u32 %v884_v20, %v883_v4  ;;  %v961_v49 = vrot.slane %v573_v63, 4  ;;  %v2290_v3 = vpack.c.bf16 %v224_v27, %v224_v27  ;;  %v565_v14 = vshrl.u32 %v2303_v33, 16  ;;  %753 = vrot.lane.b32.xlu0 %v2303_v33, %s2516_s25 }
  0x57   : > { %3942 = vst [vmem:[#allocation40_spill] sm:$0xff] %v3021_v44  ;;  %v3030_v11 = vrot.slane %v890_v39, 4  ;;  %v3032_v12 = vor.u32 %v576_v55, %v575_v25  ;;  %v3034_v5 = vrot.slane %v576_v55, 5  ;;  %v568_v44 = vshll.u32 %v2303_v33, 16 }
  0x58   : > { %v3036_v22 = vrot.slane %v885_v54, 4  ;;  %v2289_v57 = vpack.c.bf16 %v223_v60, %v223_v60  ;;  %v461_v4 = vshrl.u32 %v2290_v3, 16  ;;  %v464_v63 = vshll.u32 %v2290_v3, 16 }
  0x59   : > { %3943 = vst [vmem:[#allocation41_spill] sm:$0xff] %v3032_v12  ;;  %3944 = vst [vmem:[#allocation42_spill] sm:$0xff] %v3034_v5  ;;  %v962_v16 = vor.u32 %v961_v49, %v3034_v5  ;;  %727 = vrot.lane.b32.xlu1 %v2290_v3, %s2516_s25  ;;  %v2306_v24 = vpack.c.bf16 %v240_v21, %v240_v21  ;;  %v3041_v20 = vrot.slane %v565_v14, 7  ;;  %v955_v25 = vrot.slane %v565_v14, 4  ;;  %v239_v21 = vld [vmem:[%s2609_s11 + $0xf0] sm:$0xff] }
  0x5a   : > { %3945 = vst [vmem:[#allocation43_spill] sm:$0xff] %v3036_v22  ;;  %v956_v39 = vrot.slane %v568_v44, 5  ;;  %v453_v27 = vshrl.u32 %v2289_v57, 16  ;;  %v463_v54 = vrot.slane %v461_v4, 7  ;;  %v3045_v12 = vrot.slane %v464_v63, 5  ;;  %725 = vrot.lane.b32.xlu0 %v2289_v57, %s2516_s25 }
  0x5b   : > { %v3043_v55 = vrot.slane %v962_v16, 4  ;;  %v898_v33 = vrot.slane %v461_v4, 4  ;;  %v3048_v60 = vor.u32 %v568_v44, %v3041_v20  ;;  %v456_v22 = vshll.u32 %v2289_v57, 16 }
  0x5c   : > { %3947 = vst [vmem:[#allocation45_spill] sm:$0xff] %v3045_v12  ;;  %v957_v49 = vor.u32 %v956_v39, %v955_v25  ;;  %v3050_v5 = vrot.slane %v453_v27, 7  ;;  %v3054_v3 = vor.u32 %v464_v63, %v463_v54  ;;  %v892_v16 = vrot.slane %v453_v27, 4  ;;  %v632_v63 = vld [vmem:[#allocation2 + $0x10] sm:$0xf] }
  0x5d   : > { %3946 = vst [vmem:[#allocation44_spill] sm:$0xff] %v3043_v55  ;;  %v899_v14 = vor.u32 %v898_v33, %v3045_v12  ;;  %v589_v55 = vshrl.u32 %v2306_v24, 16  ;;  %759 = vrot.lane.b32.xlu1 %v2306_v24, %s2516_s25  ;;  %v893_v25 = vrot.slane %v456_v22, 5  ;;  %v592_v39 = vshll.u32 %v2306_v24, 16 }
  0x5e   : > { %3948 = vst [vmem:[#allocation46_spill] sm:$0xff] %v3054_v3  ;;  %v3058_v4 = vrot.slane %v957_v49, 4  ;;  %v3061_v44 = vor.u32 %v456_v22, %v3050_v5  ;;  %v2305_v3 = vpack.c.bf16 %v239_v21, %v239_v21  ;;  %v666_v12 = vsel %vm3065_vm8, %v2739_v38, %v665_v35 }
  0x5f   : > { %v3069_v54 = vrot.slane %v899_v14, 4  ;;  %v591_v27 = vrot.slane %v589_v55, 7  ;;  %v970_v33 = vrot.slane %v589_v55, 4  ;;  %v894_v22 = vor.u32 %v893_v25, %v892_v16  ;;  %v1039_v55 = vld [vmem:[#allocation2 + $0x9c] sm:$0xf] }
  0x60   : > { %3949 = vst [vmem:[#allocation47_spill] sm:$0xff] %v3061_v44  ;;  %v3077_v24 = vrot.slane %v592_v39, 5  ;;  %v906_v14 = vsel %vm3073_vm9, %v2756_v46, %v2736_v37  ;;  %v581_v44 = vshrl.u32 %v2305_v3, 16  ;;  %757 = vrot.lane.b32.xlu0 %v2305_v3, %s2516_s25  ;;  %667 = vst [vmem:[#allocation2 + $0x90] sm:$0xf] %v666_v12  ;;  %v633_v16 = vsel %vm3065_vm8, %v2742_v40, %v632_v63 }
  0x61   : > { %3952 = vst [vmem:[#allocation48_spill] sm:$0xff] %v3069_v54  ;;  %v3086_v21 = vor.u32 %v592_v39, %v591_v27  ;;  %v584_v54 = vshll.u32 %v2305_v3, 16  ;;  %1038 = vst.msk [vmem:[#allocation2 + $0x94] sm:$0xf] %vm629_vm4, %v906_v14  ;;  %v1007_v37 = vld [vmem:[#allocation2 + $0x1c] sm:$0xf]  ;;  %v834_v12 = vsel %vm3073_vm9, %v2762_v50, %v2754_v45 }
  0x62   : > { %v1011_v46 = vld [vmem:[#allocation2 + $0x2c] sm:$0xf]  ;;  %v3099_v35 = vrot.slane %v894_v22, 4  ;;  %v971_v25 = vor.u32 %v970_v33, %v3077_v24  ;;  %634 = vst [vmem:[#allocation2 + $0x10] sm:$0xf] %v633_v16  ;;  %v3106_v3 = vrot.slane %v581_v44, 7  ;;  %v1040_v33 = vsel %vm3095_vm10, %v2772_v56, %v1039_v55 }
  0x63   : > { %3955 = vst [vmem:[#allocation49_spill] sm:$0xff] %v3086_v21  ;;  %v637_v40 = vld [vmem:[#allocation2 + $0x20] sm:$0xf]  ;;  %v964_v39 = vrot.slane %v581_v44, 4  ;;  %v965_v63 = vrot.slane %v584_v54, 5  ;;  %v475_v45 = vrot.slane %v2727_v29, 4  ;;  %v1008_v50 = vsel %vm3095_vm10, %v2785_v1, %v1007_v37 }
  0x64   : > { %1005 = vst.msk [vmem:[#allocation2 + $0x14] sm:$0xf] %vm629_vm4, %v834_v12  ;;  %v3109_v27 = vrot.slane %v971_v25, 4  ;;  %v3123_v44 = vor.u32 %v584_v54, %v3106_v3  ;;  %1041 = vst [vmem:[#allocation2 + $0x9c] sm:$0xf] %v1040_v33  ;;  %v347_v16 = vrot.slane %v2729_v32, 4  ;;  %v1012_v56 = vsel %vm3095_vm10, %v2805_v17, %v1011_v46 }
  0x65   : > { %v966_v14 = vor.u32 %v965_v63, %v964_v39  ;;  %1009 = vst [vmem:[#allocation2 + $0x1c] sm:$0xf] %v1008_v50  ;;  %v363_v25 = vrot.slane %v2782_v62, 4  ;;  %v1043_v12 = vld [vmem:[#allocation2 + $0xac] sm:$0xf]  ;;  %v483_v29 = vsel %vm3111_vm13, %v475_v45, %v2748_v43  ;;  %v638_v1 = vsel %vm3065_vm8, %v2797_v8, %v637_v40  ;;  %v3962_v45 = vld [vmem:[#allocation6_spill] sm:$0xff] }
  0x66   : > { %v669_v21 = vld [vmem:[#allocation2 + $0xa0] sm:$0xf]  ;;  %v843_v32 = vsel %vm3073_vm9, %v2820_v31, %v2780_v61  ;;  %v1015_v62 = vld [vmem:[#allocation2 + $0x3c] sm:$0xf]  ;;  %v641_v54 = vld [vmem:[#allocation2 + $0x30] sm:$0xf]  ;;  %v355_v43 = vsel %vm3111_vm13, %v347_v16, %v2766_v51  ;;  %v1044_v51 = vsel %vm3095_vm10, %v2833_v52, %v1043_v12  ;;  %v915_v37 = vsel %vm3073_vm9, %v2843_v59, %v2813_v26 }
  0x67   : > { %v3140_v55 = vrot.slane %v966_v14, 4  ;;  %668 = vst.msk [vmem:[#allocation2 + $0x98] sm:$0xf] %vm629_vm4, %v483_v29  ;;  %v371_v17 = vsel %vm3111_vm13, %v363_v25, %v2787_v2  ;;  %1013 = vst [vmem:[#allocation2 + $0x2c] sm:$0xf] %v1012_v56  ;;  %v491_v61 = vrot.slane %v2815_v28, 4  ;;  %v670_v2 = vsel %vm3065_vm8, %v2826_v41, %v669_v21 }
  0x68   : > { %639 = vst [vmem:[#allocation2 + $0x20] sm:$0xf] %v638_v1  ;;  %1010 = vst.msk [vmem:[#allocation2 + $0x24] sm:$0xf] %vm629_vm4, %v843_v32  ;;  %v1047_v8 = vld [vmem:[#allocation2 + $0xbc] sm:$0xf]  ;;  %v1016_v41 = vsel %vm3095_vm10, %v2849_v9, %v1015_v62  ;;  %v642_v26 = vsel %vm3065_vm8, %v2861_v19, %v641_v54  ;;  %v852_v52 = vsel %vm3073_vm9, %v2877_v34, %v2828_v42 }
  0x69   : > { %v673_v31 = vld [vmem:[#allocation2 + $0xb0] sm:$0xf]  ;;  %636 = vst.msk [vmem:[#allocation2 + $0x18] sm:$0xf] %vm629_vm4, %v355_v43  ;;  %640 = vst.msk [vmem:[#allocation2 + $0x28] sm:$0xf] %vm629_vm4, %v371_v17  ;;  %v499_v39 = vsel %vm3111_vm13, %v491_v61, %v2822_v36 }
  0x6a   : > { %v379_v28 = vrot.slane %v2851_v10, 4  ;;  %v1019_v46 = vld [vmem:[#allocation2 + $0x4c] sm:$0xf]  ;;  %v645_v40 = vld [vmem:[#allocation2 + $0x40] sm:$0xf]  ;;  %v507_v9 = vrot.slane %v2858_v18, 4  ;;  %v1048_v10 = vsel %vm3095_vm10, %v2881_v53, %v1047_v8  ;;  %v674_v42 = vsel %vm3065_vm8, %v2872_v30, %v673_v31 }
  0x6b   : > { %1045 = vst [vmem:[#allocation2 + $0xac] sm:$0xf] %v1044_v51  ;;  %671 = vst [vmem:[#allocation2 + $0xa0] sm:$0xf] %v670_v2  ;;  %v1051_v59 = vld [vmem:[#allocation2 + $0xcc] sm:$0xf] }
  0x6c   : > { %1042 = vst.msk [vmem:[#allocation2 + $0xa4] sm:$0xf] %vm629_vm4, %v915_v37  ;;  %672 = vst.msk [vmem:[#allocation2 + $0xa8] sm:$0xf] %vm629_vm4, %v499_v39  ;;  %v387_v36 = vsel %vm3111_vm13, %v379_v28, %v2831_v47  ;;  %v677_v19 = vld [vmem:[#allocation2 + $0xc0] sm:$0xf]  ;;  %v924_v47 = vsel %vm3073_vm9, %v2886_v58, %v2856_v15  ;;  %v515_v50 = vsel %vm3111_vm13, %v507_v9, %v3962_v45 }
  0x6d   : > { %1017 = vst [vmem:[#allocation2 + $0x3c] sm:$0xf] %v1016_v41  ;;  %643 = vst [vmem:[#allocation2 + $0x30] sm:$0xf] %v642_v26  ;;  %v395_v18 = vrot.slane %v2898_v13, 4  ;;  %v3960_v34 = vld [vmem:[#allocation10_spill] sm:$0xff] }
  0x6e   : > { %1014 = vst.msk [vmem:[#allocation2 + $0x34] sm:$0xf] %vm629_vm4, %v852_v52  ;;  %644 = vst.msk [vmem:[#allocation2 + $0x38] sm:$0xf] %vm629_vm4, %v387_v36  ;;  %v1020_v53 = vsel %vm3095_vm10, %v3960_v34, %v1019_v46  ;;  %v3961_v21 = vld [vmem:[#allocation11_spill] sm:$0xff]  ;;  %v3964_v58 = vld [vmem:[#allocation14_spill] sm:$0xff] }
  0x6f   : > { %1049 = vst [vmem:[#allocation2 + $0xbc] sm:$0xf] %v1048_v10  ;;  %675 = vst [vmem:[#allocation2 + $0xb0] sm:$0xf] %v674_v42  ;;  %v646_v30 = vsel %vm3065_vm8, %v3961_v21, %v645_v40  ;;  %v1023_v63 = vld [vmem:[#allocation2 + $0x5c] sm:$0xf] }
  0x70   : > { %v649_v33 = vld [vmem:[#allocation2 + $0x50] sm:$0xf]  ;;  %1046 = vst.msk [vmem:[#allocation2 + $0xb4] sm:$0xf] %vm629_vm4, %v924_v47  ;;  %1021 = vst [vmem:[#allocation2 + $0x4c] sm:$0xf] %v1020_v53  ;;  %v1024_v28 = vsel %vm3095_vm10, %v2966_v6, %v1023_v63 }
  0x71   : > { %647 = vst [vmem:[#allocation2 + $0x40] sm:$0xf] %v646_v30  ;;  %v3963_v15 = vld [vmem:[#allocation7_spill] sm:$0xff]  ;;  %v3965_v14 = vld [vmem:[#allocation13_spill] sm:$0xff]  ;;  %v681_v56 = vld [vmem:[#allocation2 + $0xd0] sm:$0xf] }
  0x72   : > { %v861_v13 = vsel %vm3073_vm9, %v3964_v58, %v3963_v15  ;;  %v523_v16 = vrot.slane %v3965_v14, 4  ;;  %v3966_v25 = vld [vmem:[#allocation15_spill] sm:$0xff]  ;;  %v1055_v29 = vld [vmem:[#allocation2 + $0xdc] sm:$0xf]  ;;  %676 = vst.msk [vmem:[#allocation2 + $0xb8] sm:$0xf] %vm629_vm4, %v515_v50 }
  0x73   : > { %v1052_v12 = vsel %vm3095_vm10, %v3966_v25, %v1051_v59  ;;  %v3967_v1 = vld [vmem:[#allocation8_spill] sm:$0xff]  ;;  %1018 = vst.msk [vmem:[#allocation2 + $0x44] sm:$0xf] %vm629_vm4, %v861_v13  ;;  %v3969_v43 = vld [vmem:[#allocation9_spill] sm:$0xff]  ;;  %v411_v8 = vrot.slane %v2944_v7, 4  ;;  %v3973_v7 = vld [vmem:[#allocation18_spill] sm:$0xff] }
  0x74   : > { %v403_v32 = vsel %vm3111_vm13, %v395_v18, %v3967_v1  ;;  %1053 = vst [vmem:[#allocation2 + $0xcc] sm:$0xf] %v1052_v12  ;;  %v3968_v62 = vld [vmem:[#allocation16_spill] sm:$0xff]  ;;  %v3970_v17 = vld [vmem:[#allocation17_spill] sm:$0xff]  ;;  %v1027_v31 = vld [vmem:[#allocation2 + $0x6c] sm:$0xf] }
  0x75   : > { %v678_v54 = vsel %vm3065_vm8, %v3968_v62, %v677_v19  ;;  %v933_v61 = vsel %vm3073_vm9, %v3970_v17, %v3969_v43  ;;  %v653_v51 = vld [vmem:[#allocation2 + $0x60] sm:$0xf]  ;;  %648 = vst.msk [vmem:[#allocation2 + $0x48] sm:$0xf] %vm629_vm4, %v403_v32  ;;  %v3971_v2 = vld [vmem:[#allocation12_spill] sm:$0xff]  ;;  %v3972_v46 = vld [vmem:[#allocation21_spill] sm:$0xff] }
  0x76   : > { %v531_v37 = vsel %vm3111_vm13, %v523_v16, %v3971_v2  ;;  %679 = vst [vmem:[#allocation2 + $0xc0] sm:$0xf] %v678_v54  ;;  %1050 = vst.msk [vmem:[#allocation2 + $0xc4] sm:$0xf] %vm629_vm4, %v933_v61  ;;  %v650_v40 = vsel %vm3065_vm8, %v3972_v46, %v649_v33  ;;  %v3974_v39 = vld [vmem:[#allocation24_spill] sm:$0xff]  ;;  %v3975_v52 = vld [vmem:[#allocation19_spill] sm:$0xff] }
  0x77   : > { %v870_v41 = vsel %vm3073_vm9, %v3974_v39, %v3973_v7  ;;  %v1059_v26 = vld [vmem:[#allocation2 + $0xec] sm:$0xf]  ;;  %680 = vst.msk [vmem:[#allocation2 + $0xc8] sm:$0xf] %vm629_vm4, %v531_v37  ;;  %v419_v59 = vsel %vm3111_vm13, %v411_v8, %v3975_v52  ;;  %1025 = vst [vmem:[#allocation2 + $0x5c] sm:$0xf] %v1024_v28 }
  0x78   : > { %651 = vst [vmem:[#allocation2 + $0x50] sm:$0xf] %v650_v40  ;;  %1022 = vst.msk [vmem:[#allocation2 + $0x54] sm:$0xf] %vm629_vm4, %v870_v41  ;;  %v3976_v6 = vld [vmem:[#allocation23_spill] sm:$0xff]  ;;  %v3977_v9 = vld [vmem:[#allocation25_spill] sm:$0xff] }
  0x79   : > { %v539_v36 = vrot.slane %v3976_v6, 4  ;;  %v1056_v10 = vsel %vm3095_vm10, %v3977_v9, %v1055_v29  ;;  %v3978_v42 = vld [vmem:[#allocation26_spill] sm:$0xff]  ;;  %652 = vst.msk [vmem:[#allocation2 + $0x58] sm:$0xf] %vm629_vm4, %v419_v59  ;;  %v3979_v18 = vld [vmem:[#allocation20_spill] sm:$0xff]  ;;  %v3980_v34 = vld [vmem:[#allocation29_spill] sm:$0xff] }
  0x7a   : > { %v682_v19 = vsel %vm3065_vm8, %v3978_v42, %v681_v56  ;;  %v685_v47 = vld [vmem:[#allocation2 + $0xe0] sm:$0xf]  ;;  %1057 = vst [vmem:[#allocation2 + $0xdc] sm:$0xf] %v1056_v10  ;;  %v942_v53 = vsel %vm3073_vm9, %v3980_v34, %v3979_v18  ;;  %v3981_v21 = vld [vmem:[#allocation28_spill] sm:$0xff]  ;;  %v3982_v63 = vld [vmem:[#allocation35_spill] sm:$0xff] }
  0x7b   : > { %683 = vst [vmem:[#allocation2 + $0xd0] sm:$0xf] %v682_v19  ;;  %v427_v30 = vrot.slane %v3981_v21, 4  ;;  %v1028_v33 = vsel %vm3095_vm10, %v3982_v63, %v1027_v31  ;;  %v3983_v45 = vld [vmem:[#allocation31_spill] sm:$0xff]  ;;  %v1031_v15 = vld [vmem:[#allocation2 + $0x7c] sm:$0xf] }
  0x7c   : > { %v654_v50 = vsel %vm3065_vm8, %v3983_v45, %v653_v51  ;;  %v657_v58 = vld [vmem:[#allocation2 + $0x70] sm:$0xf]  ;;  %v3984_v13 = vld [vmem:[#allocation22_spill] sm:$0xff]  ;;  %1054 = vst.msk [vmem:[#allocation2 + $0xd4] sm:$0xf] %vm629_vm4, %v942_v53  ;;  %v3985_v16 = vld [vmem:[#allocation27_spill] sm:$0xff]  ;;  %v1032_v7 = vsel %vm3095_vm10, %v3030_v11, %v1031_v15 }
  0x7d   : > { %v547_v14 = vsel %vm3111_vm13, %v539_v36, %v3984_v13  ;;  %1029 = vst [vmem:[#allocation2 + $0x6c] sm:$0xf] %v1028_v33  ;;  %655 = vst [vmem:[#allocation2 + $0x60] sm:$0xf] %v654_v50  ;;  %v3986_v25 = vld [vmem:[#allocation36_spill] sm:$0xff]  ;;  %v3987_v29 = vld [vmem:[#allocation34_spill] sm:$0xff] }
  0x7e   : > { %v879_v12 = vsel %vm3073_vm9, %v3986_v25, %v3985_v16  ;;  %v555_v56 = vrot.slane %v3987_v29, 4  ;;  %v3988_v1 = vld [vmem:[#allocation38_spill] sm:$0xff]  ;;  %v1063_v62 = vld [vmem:[#allocation2 + $0xfc] sm:$0xf]  ;;  %v689_v54 = vld [vmem:[#allocation2 + $0xf0] sm:$0xf] }
  0x7f   : > { %v1060_v32 = vsel %vm3095_vm10, %v3988_v1, %v1059_v26  ;;  %684 = vst.msk [vmem:[#allocation2 + $0xd8] sm:$0xf] %vm629_vm4, %v547_v14  ;;  %v3989_v43 = vld [vmem:[#allocation30_spill] sm:$0xff]  ;;  %1026 = vst.msk [vmem:[#allocation2 + $0x64] sm:$0xf] %vm629_vm4, %v879_v12  ;;  %v3990_v61 = vld [vmem:[#allocation37_spill] sm:$0xff]  ;;  %v690_v36 = vsel %vm3065_vm8, %v3048_v60, %v689_v54 }
  0x80   : > { %v435_v17 = vsel %vm3111_vm13, %v427_v30, %v3989_v43  ;;  %1061 = vst [vmem:[#allocation2 + $0xec] sm:$0xf] %v1060_v32  ;;  %v686_v8 = vsel %vm3065_vm8, %v3990_v61, %v685_v47  ;;  %v3991_v31 = vld [vmem:[#allocation32_spill] sm:$0xff]  ;;  %v443_v2 = vrot.slane %v3016_v23, 4  ;;  %v1035_v37 = vld [vmem:[#allocation2 + $0x8c] sm:$0xf] }
  0x81   : > { %v951_v51 = vsel %vm3073_vm9, %v3019_v0, %v3991_v31  ;;  %v661_v28 = vld [vmem:[#allocation2 + $0x80] sm:$0xf]  ;;  %656 = vst.msk [vmem:[#allocation2 + $0x68] sm:$0xf] %vm629_vm4, %v435_v17  ;;  %v3992_v46 = vld [vmem:[#allocation33_spill] sm:$0xff]  ;;  %v658_v0 = vsel %vm3065_vm8, %v3027_v48, %v657_v58  ;;  %v3993_v23 = vld [vmem:[#allocation39_spill] sm:$0xff] }
  0x82   : > { %v563_v40 = vsel %vm3111_vm13, %v555_v56, %v3992_v46  ;;  %687 = vst [vmem:[#allocation2 + $0xe0] sm:$0xf] %v686_v8  ;;  %1058 = vst.msk [vmem:[#allocation2 + $0xe4] sm:$0xf] %vm629_vm4, %v951_v51  ;;  %v3994_v39 = vld [vmem:[#allocation43_spill] sm:$0xff]  ;;  %v3995_v52 = vld [vmem:[#allocation40_spill] sm:$0xff] }
  0x83   : > { %v888_v41 = vsel %vm3073_vm9, %v3994_v39, %v3993_v23  ;;  %v1067_v26 = vld [vmem:[#allocation2 + $0x10c] sm:$0xf]  ;;  %688 = vst.msk [vmem:[#allocation2 + $0xe8] sm:$0xf] %vm629_vm4, %v563_v40  ;;  %v451_v59 = vsel %vm3111_vm13, %v443_v2, %v3995_v52  ;;  %1033 = vst [vmem:[#allocation2 + $0x7c] sm:$0xf] %v1032_v7 }
  0x84   : > { %659 = vst [vmem:[#allocation2 + $0x70] sm:$0xf] %v658_v0  ;;  %1030 = vst.msk [vmem:[#allocation2 + $0x74] sm:$0xf] %vm629_vm4, %v888_v41  ;;  %v571_v11 = vrot.slane %v3041_v20, 4  ;;  %v3996_v6 = vld [vmem:[#allocation44_spill] sm:$0xff]  ;;  %v1068_v30 = vsel %vm3095_vm10, %v3109_v27, %v1067_v26 }
  0x85   : > { %v1064_v48 = vsel %vm3095_vm10, %v3996_v6, %v1063_v62  ;;  %v693_v9 = vld [vmem:[#allocation2 + $0x100] sm:$0xf]  ;;  %660 = vst.msk [vmem:[#allocation2 + $0x78] sm:$0xf] %vm629_vm4, %v451_v59  ;;  %691 = vst [vmem:[#allocation2 + $0xf0] sm:$0xf] %v690_v36 }
  0x86   : > { %1065 = vst [vmem:[#allocation2 + $0xfc] sm:$0xf] %v1064_v48  ;;  %v3997_v10 = vld [vmem:[#allocation42_spill] sm:$0xff]  ;;  %v459_v20 = vrot.slane %v3050_v5, 4  ;;  %v3998_v19 = vld [vmem:[#allocation48_spill] sm:$0xff]  ;;  %v3999_v18 = vld [vmem:[#allocation47_spill] sm:$0xff]  ;;  %v694_v45 = vsel %vm3065_vm8, %v3123_v44, %v693_v9 }
  0x87   : > { %v960_v42 = vsel %vm3073_vm9, %v3058_v4, %v3997_v10  ;;  %v1036_v47 = vsel %vm3095_vm10, %v3998_v19, %v1035_v37  ;;  %v662_v60 = vsel %vm3065_vm8, %v3999_v18, %v661_v28  ;;  %v4000_v34 = vld [vmem:[#allocation41_spill] sm:$0xff]  ;;  %v587_v4 = vrot.slane %v3106_v3, 4  ;;  %v4002_v63 = vld [vmem:[#allocation46_spill] sm:$0xff]  ;;  %1069 = vst [vmem:[#allocation2 + $0x10c] sm:$0xf] %v1068_v30 }
  0x88   : > { %v579_v53 = vsel %vm3111_vm13, %v571_v11, %v4000_v34  ;;  %1062 = vst.msk [vmem:[#allocation2 + $0xf4] sm:$0xf] %vm629_vm4, %v960_v42  ;;  %1037 = vst [vmem:[#allocation2 + $0x8c] sm:$0xf] %v1036_v47  ;;  %v4001_v21 = vld [vmem:[#allocation45_spill] sm:$0xff]  ;;  %v467_v33 = vsel %vm3111_vm13, %v459_v20, %v4002_v63 }
  0x89   : > { %663 = vst [vmem:[#allocation2 + $0x80] sm:$0xf] %v662_v60  ;;  %v897_v5 = vsel %vm3073_vm9, %v3099_v35, %v4001_v21  ;;  %692 = vst.msk [vmem:[#allocation2 + $0xf8] sm:$0xf] %vm629_vm4, %v579_v53  ;;  %v969_v35 = vsel %vm3073_vm9, %v3140_v55, %v3077_v24  ;;  %v4003_v38 = vld [vmem:[#allocation49_spill] sm:$0xff] }
  0x8a   : > { %1034 = vst.msk [vmem:[#allocation2 + $0x84] sm:$0xf] %vm629_vm4, %v897_v5  ;;  %664 = vst.msk [vmem:[#allocation2 + $0x88] sm:$0xf] %vm629_vm4, %v467_v33  ;;  %v595_v3 = vsel %vm3111_vm13, %v587_v4, %v4003_v38  ;;  %v2414_v13 = vld [vmem:[#allocation2 + $0x14] ss:$8 sps:$4 sm:$0xff]  }
  0x8b   : > { %695 = vst [vmem:[#allocation2 + $0x100] sm:$0xf] %v694_v45  ;;  %1066 = vst.msk [vmem:[#allocation2 + $0x104] sm:$0xf] %vm629_vm4, %v969_v35  ;;  %v2418_v16 = vld [vmem:[#allocation2 + $0x94] ss:$8 sps:$4 sm:$0xff]   ;;  %2249 = vmatprep.mubr.msk.bf16.mxu0 %vm1412_vm3, %v2414_v13 }
  0x8c   : > { %696 = vst.msk [vmem:[#allocation2 + $0x108] sm:$0xf] %vm629_vm4, %v595_v3  ;;  %2257 = vmatprep.mubr.msk.bf16.mxu1 %vm1412_vm3, %v2418_v16  ;;  %v2419_v1 = vld [vmem:[#allocation2 + $0x24] ss:$8 sps:$4 sm:$0xff]   ;;  %v2423_v46 = vld [vmem:[#allocation2 + $0x34] ss:$8 sps:$4 sm:$0xff]  }
  0x8d   : > { %v2421_v61 = vld [vmem:[#allocation2 + $0xa4] ss:$8 sps:$4 sm:$0xff]   ;;  %v2425_v41 = vld [vmem:[#allocation2 + $0xb4] ss:$8 sps:$4 sm:$0xff]  }
  0x8e   : > { %v730_v27 = vpop.permute.xlu1 %729  ;;  %v2427_v48 = vld [vmem:[#allocation2 + $0x44] ss:$8 sps:$4 sm:$0xff]   ;;  %v2431_v34 = vld [vmem:[#allocation2 + $0x54] ss:$8 sps:$4 sm:$0xff]  }
  0x8f   : > { %v698_v57 = vpop.permute.xlu0 %697  ;;  %810 = vst.msk [vmem:[#allocation2 + $0x90] sm:$0xf] %vm793_vm14, %v730_v27  ;;  %v2429_v19 = vld [vmem:[#allocation2 + $0xc4] ss:$8 sps:$4 sm:$0xff]   ;;  %v2433_v63 = vld [vmem:[#allocation2 + $0xd4] ss:$8 sps:$4 sm:$0xff]  }
  0x90   : > { %794 = vst.msk [vmem:[#allocation2 + $0x10] sm:$0xf] %vm793_vm14, %v698_v57  ;;  %v2435_v57 = vld [vmem:[#allocation2 + $0x64] ss:$8 sps:$4 sm:$0xff]  }
  0x92   : > { %v732_v49 = vpop.permute.xlu1 %731 }
  0x93   : > { %v700_v24 = vpop.permute.xlu0 %699  ;;  %811 = vst.msk [vmem:[#allocation2 + $0x98] sm:$0xf] %vm793_vm14, %v732_v49 }
  0x94   : > { %795 = vst.msk [vmem:[#allocation2 + $0x18] sm:$0xf] %vm793_vm14, %v700_v24 }
  0x96   : > { %v704_v22 = vpop.permute.xlu1 %703 }
  0x97   : > { %v702_v44 = vpop.permute.xlu0 %701  ;;  %797 = vst.msk [vmem:[#allocation2 + $0x28] sm:$0xf] %vm793_vm14, %v704_v22  ;;  %v1072_v55 = vld [vmem:[#allocation2 + $0x10] sm:$0xff] }
  0x98   : > { %796 = vst.msk [vmem:[#allocation2 + $0x20] sm:$0xf] %vm793_vm14, %v702_v44 }
  0x9a   : > { %v736_v50 = vpop.permute.xlu1 %735  ;;  %v2416_v14 = vld [vmem:[#allocation2 + $0x90] ss:$8 sps:$4 sm:$0xff]  }
  0x9b   : > { %v734_v15 = vpop.permute.xlu0 %733  ;;  %v1073_v58 = vld [vmem:[#allocation2 + $0x18] sm:$0xff]  ;;  %813 = vst.msk [vmem:[#allocation2 + $0xa8] sm:$0xf] %vm793_vm14, %v736_v50  ;;  %1586 = vmatmul.mubr.bf16.vlgmr.msra.gmra.mxu1 %v2416_v14  ;;  %v2437_v50 = vld [vmem:[#allocation2 + $0xe4] ss:$8 sps:$4 sm:$0xff]  }
  0x9c   : > { %812 = vst.msk [vmem:[#allocation2 + $0xa0] sm:$0xf] %vm793_vm14, %v734_v15  ;;  %v2190_v25 = vcombine.low %v1072_v55, %v1073_v58  ;;  %2258 = vmatprep.mubr.msk.bf16.mxu1 %vm1412_vm3, %v2421_v61  ;;  %v2439_v14 = vld [vmem:[#allocation2 + $0x74] ss:$8 sps:$4 sm:$0xff]   ;;  %v2453_v61 = vld [vmem:[#allocation2 + $0x110] ss:$8 sps:$4 sm:$0xff]  }
  0x9e   : > { %1508 = vmatmul.mubr.bf16.gmra.mxu0 %v2190_v25  ;;  %v708_v12 = vpop.permute.xlu1 %707  ;;  %v1075_v56 = vld [vmem:[#allocation2 + $0x28] sm:$0xff] }
  0x9f   : > { %v1074_v29 = vld [vmem:[#allocation2 + $0x20] sm:$0xff]  ;;  %799 = vst.msk [vmem:[#allocation2 + $0x38] sm:$0xf] %vm793_vm14, %v708_v12  ;;  %2250 = vmatprep.mubr.msk.bf16.mxu0 %vm1412_vm3, %v2419_v1  ;;  %v706_v32 = vpop.permute.xlu0 %705 }
  0xa0   : > { %v2192_v62 = vcombine.low %v1074_v29, %v1075_v56  ;;  %798 = vst.msk [vmem:[#allocation2 + $0x30] sm:$0xf] %vm793_vm14, %v706_v32  ;;  %v2441_v29 = vld [vmem:[#allocation2 + $0xf4] ss:$8 sps:$4 sm:$0xff]   ;;  %v2445_v32 = vld [vmem:[#allocation2 + $0x84] ss:$8 sps:$4 sm:$0xff]  }
  0xa2   : > { %v740_v54 = vpop.permute.xlu1 %739  ;;  %v1091_v17 = vld [vmem:[#allocation2 + $0xa8] sm:$0xff] }
  0xa3   : > { %v1090_v43 = vld [vmem:[#allocation2 + $0xa0] sm:$0xff]  ;;  %815 = vst.msk [vmem:[#allocation2 + $0xb8] sm:$0xf] %vm793_vm14, %v740_v54  ;;  %v738_v31 = vpop.permute.xlu0 %737  ;;  %v2451_v54 = vld [vmem:[#allocation2 + $0x114] ss:$8 sps:$4 sm:$0xff]  }
  0xa4   : > { %v2208_v8 = vcombine.low %v1090_v43, %v1091_v17  ;;  %814 = vst.msk [vmem:[#allocation2 + $0xb0] sm:$0xf] %vm793_vm14, %v738_v31  ;;  %v2447_v43 = vld [vmem:[#allocation2 + $0x104] ss:$8 sps:$4 sm:$0xff]  }
  0xa6   : > { %1516 = vmatmul.mubr.bf16.gmra.mxu0 %v2192_v62  ;;  %v712_v51 = vpop.permute.xlu1 %711  ;;  %1596 = vmatmul.mubr.bf16.gmra.mxu1 %v2208_v8  ;;  %v1077_v2 = vld [vmem:[#allocation2 + $0x38] sm:$0xff] }
  0xa7   : > { %801 = vst.msk [vmem:[#allocation2 + $0x48] sm:$0xf] %vm793_vm14, %v712_v51  ;;  %v1076_v28 = vld [vmem:[#allocation2 + $0x30] sm:$0xff]  ;;  %2251 = vmatprep.mubr.msk.bf16.mxu0 %vm1412_vm3, %v2423_v46  ;;  %2259 = vmatprep.mubr.msk.bf16.mxu1 %vm1412_vm3, %v2425_v41 }
  0xa8   : > { %v2194_v7 = vcombine.low %v1076_v28, %v1077_v2 }
  0xa9   : > { %v710_v37 = vpop.permute.xlu0 %709 }
  0xaa   : > { %800 = vst.msk [vmem:[#allocation2 + $0x40] sm:$0xf] %vm793_vm14, %v710_v37  ;;  %v1093_v0 = vld [vmem:[#allocation2 + $0xb8] sm:$0xff] }
  0xab   : > { %v744_v40 = vpop.permute.xlu1 %743  ;;  %v1092_v39 = vld [vmem:[#allocation2 + $0xb0] sm:$0xff] }
  0xac   : > { %817 = vst.msk [vmem:[#allocation2 + $0xc8] sm:$0xf] %vm793_vm14, %v744_v40  ;;  %v2210_v26 = vcombine.low %v1092_v39, %v1093_v0 }
  0xad   : > { %v742_v23 = vpop.permute.xlu0 %741 }
  0xae   : > { %1526 = vmatmul.mubr.bf16.gmra.mxu0 %v2194_v7  ;;  %816 = vst.msk [vmem:[#allocation2 + $0xc0] sm:$0xf] %vm793_vm14, %v742_v23  ;;  %v1079_v52 = vld [vmem:[#allocation2 + $0x48] sm:$0xff]  ;;  %1606 = vmatmul.mubr.bf16.gmra.mxu1 %v2210_v26 }
  0xaf   : > { %2252 = vmatprep.mubr.msk.bf16.mxu0 %vm1412_vm3, %v2427_v48  ;;  %2260 = vmatprep.mubr.msk.bf16.mxu1 %vm1412_vm3, %v2429_v19 }
  0xb1   : > { %v716_v59 = vpop.permute.xlu1 %715  ;;  %v1078_v6 = vld [vmem:[#allocation2 + $0x40] sm:$0xff] }
  0xb2   : > { %v714_v11 = vpop.permute.xlu0 %713  ;;  %803 = vst.msk [vmem:[#allocation2 + $0x58] sm:$0xf] %vm793_vm14, %v716_v59  ;;  %v2196_v36 = vcombine.low %v1078_v6, %v1079_v52 }
  0xb3   : > { %802 = vst.msk [vmem:[#allocation2 + $0x50] sm:$0xf] %vm793_vm14, %v714_v11  ;;  %v1095_v9 = vld [vmem:[#allocation2 + $0xc8] sm:$0xff] }
  0xb5   : > { %v748_v10 = vpop.permute.xlu1 %747  ;;  %v1094_v20 = vld [vmem:[#allocation2 + $0xc0] sm:$0xff] }
  0xb6   : > { %v746_v42 = vpop.permute.xlu0 %745  ;;  %1536 = vmatmul.mubr.bf16.gmra.mxu0 %v2196_v36  ;;  %819 = vst.msk [vmem:[#allocation2 + $0xd8] sm:$0xf] %vm793_vm14, %v748_v10  ;;  %v2212_v47 = vcombine.low %v1094_v20, %v1095_v9 }
  0xb7   : > { %818 = vst.msk [vmem:[#allocation2 + $0xd0] sm:$0xf] %vm793_vm14, %v746_v42  ;;  %2253 = vmatprep.mubr.msk.bf16.mxu0 %vm1412_vm3, %v2431_v34 }
  0xb8   : > { %1616 = vmatmul.mubr.bf16.gmra.mxu1 %v2212_v47 }
  0xb9   : > { %v1081_v60 = vld [vmem:[#allocation2 + $0x58] sm:$0xff]  ;;  %2261 = vmatprep.mubr.msk.bf16.mxu1 %vm1412_vm3, %v2433_v63 }
  0xba   : > { %v1080_v18 = vld [vmem:[#allocation2 + $0x50] sm:$0xff]  ;;  %v720_v53 = vpop.permute.xlu1 %719  ;;  %v718_v21 = vpop.permute.xlu0 %717 }
  0xbb   : > { %v2198_v5 = vcombine.low %v1080_v18, %v1081_v60  ;;  %805 = vst.msk [vmem:[#allocation2 + $0x68] sm:$0xf] %vm793_vm14, %v720_v53  ;;  %804 = vst.msk [vmem:[#allocation2 + $0x60] sm:$0xf] %vm793_vm14, %v718_v21 }
  0xbd   : > { %v1097_v30 = vld [vmem:[#allocation2 + $0xd8] sm:$0xff] }
  0xbe   : > { %v1096_v4 = vld [vmem:[#allocation2 + $0xd0] sm:$0xff]  ;;  %1546 = vmatmul.mubr.bf16.gmra.mxu0 %v2198_v5  ;;  %v752_v33 = vpop.permute.xlu1 %751  ;;  %v750_v45 = vpop.permute.xlu0 %749 }
  0xbf   : > { %v2214_v35 = vcombine.low %v1096_v4, %v1097_v30  ;;  %821 = vst.msk [vmem:[#allocation2 + $0xe8] sm:$0xf] %vm793_vm14, %v752_v33  ;;  %820 = vst.msk [vmem:[#allocation2 + $0xe0] sm:$0xf] %vm793_vm14, %v750_v45  ;;  %2254 = vmatprep.mubr.msk.bf16.mxu0 %vm1412_vm3, %v2435_v57 }
  0xc1   : > { %1626 = vmatmul.mubr.bf16.gmra.mxu1 %v2214_v35 }
  0xc2   : > { %v1082_v3 = vld [vmem:[#allocation2 + $0x60] sm:$0xff]  ;;  %v1083_v27 = vld [vmem:[#allocation2 + $0x68] sm:$0xff]  ;;  %2262 = vmatprep.mubr.msk.bf16.mxu1 %vm1412_vm3, %v2437_v50 }
  0xc3   : > { %v724_v38 = vpop.permute.xlu1 %723  ;;  %v722_v49 = vpop.permute.xlu0 %721  ;;  %v2200_v24 = vcombine.low %v1082_v3, %v1083_v27 }
  0xc4   : > { %807 = vst.msk [vmem:[#allocation2 + $0x78] sm:$0xf] %vm793_vm14, %v724_v38  ;;  %806 = vst.msk [vmem:[#allocation2 + $0x70] sm:$0xf] %vm793_vm14, %v722_v49 }
  0xc6   : > { %1556 = vmatmul.mubr.bf16.gmra.mxu0 %v2200_v24  ;;  %v1098_v44 = vld [vmem:[#allocation2 + $0xe0] sm:$0xff]  ;;  %v1099_v55 = vld [vmem:[#allocation2 + $0xe8] sm:$0xff] }
  0xc7   : > { %v756_v22 = vpop.permute.xlu1 %755  ;;  %v2216_v15 = vcombine.low %v1098_v44, %v1099_v55  ;;  %2255 = vmatprep.mubr.msk.bf16.mxu0 %vm1412_vm3, %v2439_v14 }
  0xc8   : > { %823 = vst.msk [vmem:[#allocation2 + $0xf8] sm:$0xf] %vm793_vm14, %v756_v22  ;;  %v754_v58 = vpop.permute.xlu0 %753 }
  0xc9   : > { %1636 = vmatmul.mubr.bf16.gmra.mxu1 %v2216_v15  ;;  %822 = vst.msk [vmem:[#allocation2 + $0xf0] sm:$0xf] %vm793_vm14, %v754_v58 }
  0xca   : > { %2263 = vmatprep.mubr.msk.bf16.mxu1 %vm1412_vm3, %v2441_v29 }
  0xcb   : > { %v728_v13 = vpop.permute.xlu1 %727  ;;  %v2443_v16 = vld [vmem:[#allocation2 + $0x70] ss:$8 sps:$4 sm:$0xff]  }
  0xcc   : > { %809 = vst.msk [vmem:[#allocation2 + $0x88] sm:$0xf] %vm793_vm14, %v728_v13  ;;  %v726_v25 = vpop.permute.xlu0 %725 }
  0xcd   : > { %808 = vst.msk [vmem:[#allocation2 + $0x80] sm:$0xf] %vm793_vm14, %v726_v25 }
  0xce   : > { %1566 = vmatmul.mubr.bf16.gmra.mxu0 %v2443_v16 }
  0xcf   : > { %v760_v12 = vpop.permute.xlu1 %759  ;;  %2256 = vmatprep.mubr.msk.bf16.mxu0 %vm1412_vm3, %v2445_v32 }
  0xd0   : > { %825 = vst.msk [vmem:[#allocation2 + $0x108] sm:$0xf] %vm793_vm14, %v760_v12  ;;  %v2444_v56 = vld [vmem:[#allocation2 + $0xf0] ss:$8 sps:$4 sm:$0xff]  }
  0xd1   : > { %1646 = vmatmul.mubr.bf16.gmra.mxu1 %v2444_v56 }
  0xd2   : > { %v758_v1 = vpop.permute.xlu0 %757  ;;  %2264 = vmatprep.mubr.msk.bf16.mxu1 %vm1412_vm3, %v2447_v43 }
  0xd3   : > { %824 = vst.msk [vmem:[#allocation2 + $0x100] sm:$0xf] %vm793_vm14, %v758_v1 }
  0xd4   : > { %v2449_v62 = vld [vmem:[#allocation2 + $0x80] ss:$8 sps:$4 sm:$0xff]  }
  0xd6   : > { %1576 = vmatmul.mubr.bf16.gmra.mxu0 %v2449_v62 }
  0xda   : > { %v2450_v17 = vld [vmem:[#allocation2 + $0x100] ss:$8 sps:$4 sm:$0xff]  }
  0xdb   : > { %1656 = vmatmul.mubr.bf16.gmra.mxu1 %v2450_v17 }
  0xdc   : > { %2265 = vmatprep.mubr.msk.bf16.mxu1 %vm1412_vm3, %v2451_v54 }
  0xe3   : > { %1666 = vmatmul.mubr.bf16.gmra.mxu1 %v2453_v61 }
 0x107   : > { %v3409_v8 = vpop.f32.mrf.mxu0 }
 0x109   : > { %v1503_v31 = vpop.f32.mrf.mxu0 }
 0x10b   : > { %v3411_v51 = vpop.f32.mrf.mxu0 }
 0x10d   : > { %v1506_v2 = vpop.f32.mrf.mxu0 }
 0x15b   : > { %v3415_v28 = vpop.f32.mrf.mxu1 }
 0x15d   : > { %v3419_v40 = vpop.f32.mrf.mxu1 }
 0x15e   : > { %v3413_v37 = vpop.f32.mrf.mxu0  ;;  %4004 = vst [vmem:[#allocation10_spill] sm:$0xff] %v3419_v40  ;;  %v3593_v40 = vld [vmem:[%s3882_s2] ss:$0 sm:$0xff] }
 0x15f   : > { %1706 = vrot.lane.b32.xlu0 %v3413_v37, %s2516_s25  ;;  %v3423_v0 = vpop.f32.mrf.mxu1 }
 0x160   : > { %v1511_v46 = vpop.f32.mrf.mxu0 }
 0x161   : > { %v3429_v39 = vpop.f32.mrf.mxu1 }
 0x162   : > { %v3421_v7 = vpop.f32.mrf.mxu0  ;;  %4005 = vst [vmem:[#allocation11_spill] sm:$0xff] %v3429_v39 }
 0x163   : > { %1738 = vrot.lane.b32.xlu0 %v3415_v28, %s2516_s25  ;;  %1708 = vrot.lane.b32.xlu1 %v3421_v7, %s2516_s25 }
 0x164   : > { %v1514_v23 = vpop.f32.mrf.mxu0 }
 0x166   : > { %v3431_v41 = vpop.f32.mrf.mxu0  ;;  %v3433_v26 = vpop.f32.mrf.mxu1 }
 0x167   : > { %1740 = vrot.lane.b32.xlu1 %v3423_v0, %s2516_s25  ;;  %1710 = vrot.lane.b32.xlu0 %v3431_v41, %s2516_s25 }
 0x168   : > { %v3439_v52 = vpop.f32.mrf.mxu0  ;;  %v3441_v59 = vpop.f32.mrf.mxu1 }
 0x16a   : > { %v3443_v11 = vpop.f32.mrf.mxu0  ;;  %v3445_v6 = vpop.f32.mrf.mxu1 }
 0x16b   : > { %1742 = vrot.lane.b32.xlu0 %v3433_v26, %s2516_s25  ;;  %1712 = vrot.lane.b32.xlu1 %v3443_v11, %s2516_s25 }
 0x16c   : > { %v3451_v48 = vpop.f32.mrf.mxu0  ;;  %v3453_v36 = vpop.f32.mrf.mxu1 }
 0x16e   : > { %v3455_v9 = vpop.f32.mrf.mxu0  ;;  %v3463_v42 = vpop.f32.mrf.mxu1 }
 0x16f   : > { %1744 = vrot.lane.b32.xlu1 %v3445_v6, %s2516_s25  ;;  %1714 = vrot.lane.b32.xlu0 %v3455_v9, %s2516_s25 }
 0x170   : > { %v3461_v10 = vpop.f32.mrf.mxu0  ;;  %v3467_v19 = vpop.f32.mrf.mxu1 }
 0x172   : > { %v3465_v20 = vpop.f32.mrf.mxu0  ;;  %v3475_v18 = vpop.f32.mrf.mxu1 }
 0x173   : > { %1746 = vrot.lane.b32.xlu0 %v3463_v42, %s2516_s25  ;;  %1716 = vrot.lane.b32.xlu1 %v3465_v20, %s2516_s25 }
 0x174   : > { %v3473_v47 = vpop.f32.mrf.mxu0  ;;  %v3479_v34 = vpop.f32.mrf.mxu1 }
 0x176   : > { %v3477_v60 = vpop.f32.mrf.mxu0 }
 0x177   : > { %1748 = vrot.lane.b32.xlu1 %v3475_v18, %s2516_s25  ;;  %1718 = vrot.lane.b32.xlu0 %v3477_v60, %s2516_s25 }
 0x178   : > { %v3485_v53 = vpop.f32.mrf.mxu0  ;;  %v3487_v21 = vpop.f32.mrf.mxu1 }
 0x17a   : > { %v3489_v5 = vpop.f32.mrf.mxu0  ;;  %v3491_v4 = vpop.f32.mrf.mxu1 }
 0x17b   : > { %1750 = vrot.lane.b32.xlu0 %v3487_v21, %s2516_s25  ;;  %1720 = vrot.lane.b32.xlu1 %v3489_v5, %s2516_s25 }
 0x17c   : > { %v3497_v30 = vpop.f32.mrf.mxu0  ;;  %v3499_v63 = vpop.f32.mrf.mxu1 }
 0x17e   : > { %v3501_v33 = vpop.f32.mrf.mxu0  ;;  %v3503_v45 = vpop.f32.mrf.mxu1 }
 0x17f   : > { %1752 = vrot.lane.b32.xlu1 %v3499_v63, %s2516_s25  ;;  %1722 = vrot.lane.b32.xlu0 %v3501_v33, %s2516_s25 }
 0x180   : > { %v3509_v35 = vpop.f32.mrf.mxu0 }
 0x181   : > { %v3511_v38 = vpop.f32.mrf.mxu1 }
 0x182   : > { %v3513_v3 = vpop.f32.mrf.mxu0 }
 0x183   : > { %v3515_v27 = vpop.f32.mrf.mxu1  ;;  %1754 = vrot.lane.b32.xlu0 %v3511_v38, %s2516_s25  ;;  %1724 = vrot.lane.b32.xlu1 %v3513_v3, %s2516_s25 }
 0x184   : > { %v3521_v57 = vpop.f32.mrf.mxu0 }
 0x185   : > { %v3523_v49 = vpop.f32.mrf.mxu1 }
 0x186   : > { %v3525_v24 = vpop.f32.mrf.mxu0 }
 0x187   : > { %v3527_v22 = vpop.f32.mrf.mxu1  ;;  %1756 = vrot.lane.b32.xlu1 %v3523_v49, %s2516_s25  ;;  %1726 = vrot.lane.b32.xlu0 %v3525_v24, %s2516_s25 }
 0x188   : > { %v3533_v44 = vpop.f32.mrf.mxu0 }
 0x189   : > { %v3535_v55 = vpop.f32.mrf.mxu1 }
 0x18a   : > { %4006 = vst [vmem:[#allocation6_spill] sm:$0xff] %v3535_v55  ;;  %v3537_v50 = vpop.f32.mrf.mxu0 }
 0x18b   : > { %4007 = vst [vmem:[#allocation7_spill] sm:$0xff] %v3537_v50  ;;  %1758 = vrot.lane.b32.xlu0 %v3535_v55, %s2516_s25  ;;  %1728 = vrot.lane.b32.xlu1 %v3537_v50, %s2516_s25  ;;  %v3543_v15 = vpop.f32.mrf.mxu1 }
 0x18c   : > { %v3545_v58 = vpop.f32.mrf.mxu0 }
 0x18d   : > { %v3547_v13 = vpop.f32.mrf.mxu1 }
 0x18e   : > { %4008 = vst [vmem:[#allocation14_spill] sm:$0xff] %v3547_v13  ;;  %v3549_v14 = vpop.f32.mrf.mxu0 }
 0x18f   : > { %4009 = vst [vmem:[#allocation13_spill] sm:$0xff] %v3549_v14  ;;  %1760 = vrot.lane.b32.xlu1 %v3547_v13, %s2516_s25  ;;  %1730 = vrot.lane.b32.xlu0 %v3549_v14, %s2516_s25  ;;  %v3555_v16 = vpop.f32.mrf.mxu1 }
 0x190   : > { %v3557_v25 = vpop.f32.mrf.mxu0 }
 0x191   : > { %v3563_v29 = vpop.f32.mrf.mxu1 }
 0x192   : > { %v3559_v12 = vpop.f32.mrf.mxu0  ;;  %4011 = vst [vmem:[#allocation8_spill] sm:$0xff] %v3563_v29 }
 0x193   : > { %4010 = vst [vmem:[#allocation15_spill] sm:$0xff] %v3559_v12  ;;  %1732 = vrot.lane.b32.xlu1 %v3559_v12, %s2516_s25  ;;  %1762 = vrot.lane.b32.xlu0 %v3563_v29, %s2516_s25  ;;  %v3569_v1 = vpop.f32.mrf.mxu1 }
 0x194   : > { %v3565_v56 = vpop.f32.mrf.mxu0 }
 0x195   : > { %v3571_v32 = vpop.f32.mrf.mxu1 }
 0x196   : > { %4012 = vst [vmem:[#allocation16_spill] sm:$0xff] %v3571_v32  ;;  %v1577_v62 = vpop.f32.mrf.mxu0 }
 0x197   : > { %1764 = vrot.lane.b32.xlu1 %v3571_v32, %s2516_s25  ;;  %1734 = vrot.lane.b32.xlu0 %v1577_v62, %s2516_s25  ;;  %v3576_v54 = vpop.f32.mrf.mxu1 }
 0x198   : > { %v3578_v43 = vpop.f32.mrf.mxu0 }
 0x19a   : > { %v1581_v17 = vpop.f32.mrf.mxu0 }
 0x19b   : > { %v1657_v61 = vpop.f32.mrf.mxu1  ;;  %1736 = vrot.lane.b32.xlu1 %v1581_v17, %s2516_s25 }
 0x19c   : > { %1766 = vrot.lane.b32.xlu0 %v1657_v61, %s2516_s25 }
 0x19d   : > { %v3582_v31 = vpop.f32.mrf.mxu1 }
 0x19e   : > { %4013 = vst [vmem:[#allocation9_spill] sm:$0xff] %v3582_v31 }
 0x19f   : > { %v1661_v2 = vpop.f32.mrf.mxu1 }
 0x1a0   : > { %1768 = vrot.lane.b32.xlu1 %v1661_v2, %s2516_s25  ;;  %v3600_v2 = vld [vmem:[%s3882_s2 + $0x1] ss:$0 sm:$0xff] }
 0x1a1   : > { %v3585_v46 = vpop.f32.mrf.mxu1 }
 0x1a2   : > { %4014 = vst [vmem:[#allocation17_spill] sm:$0xff] %v3585_v46 }
 0x1a3   : > { %v1667_v23 = vpop.f32.mrf.mxu1 }
 0x1a5   : > { %v3587_v32 = vpop.f32.mrf.mxu1 }
 0x1a6   : > { %4015 = vst [vmem:[#allocation12_spill] sm:$0xff] %v3587_v32 }
 0x1a7   : > { %v1670_v39 = vpop.f32.mrf.mxu1 }
 0x1d1   : > { %v1707_v29 = vpop.permute.xlu0 %1706 }
 0x1d2   : > { %v1802_v12 = vadd.f32 %v1707_v29, %v3409_v8  ;;  %v3607_v29 = vld [vmem:[%s3882_s2 + $0x2] ss:$0 sm:$0xff] }
 0x1d4   : > { %v1834_v61 = vadd.f32 %v1802_v12, %v3439_v52 }
 0x1d5   : > { %v1739_v23 = vpop.permute.xlu0 %1738  ;;  %v1709_v46 = vpop.permute.xlu1 %1708 }
 0x1d6   : > { %v1871_v39 = vmul.f32 %v3593_v40, %v1834_v61  ;;  %v1818_v32 = vadd.f32 %v1739_v23, %v1577_v62  ;;  %v1803_v8 = vadd.f32 %v1709_v46, %v3411_v51 }
 0x1d8   : > { %v1908_v52 = vadd.f32 %v3600_v2, %v1871_v39  ;;  %v1850_v12 = vadd.f32 %v1818_v32, %v3441_v59  ;;  %v1835_v14 = vadd.f32 %v1803_v8, %v3451_v48 }
 0x1d9   : > { %v1741_v13 = vpop.permute.xlu1 %1740  ;;  %v1711_v31 = vpop.permute.xlu0 %1710 }
 0x1da   : > { %vm1940_vm15 = vcmp.gt.f32.partialorder %v1908_v52, 0.0  ;;  %v1977_v62 = vmul.f32 %v3607_v29, %v1908_v52  ;;  %v1887_v51 = vmul.f32 %v3593_v40, %v1850_v12  ;;  %v1872_v46 = vmul.f32 %v3593_v40, %v1835_v14 }
 0x1db   : > { %v1819_v61 = vadd.f32 %v1741_v13, %v1581_v17  ;;  %v1804_v23 = vadd.f32 %v1711_v31, %v3413_v37 }
 0x1dc   : > { %v2009_v55 = vsel %vm1940_vm15, %v1908_v52, %v1977_v62  ;;  %v1924_v50 = vadd.f32 %v3600_v2, %v1887_v51  ;;  %v1909_v39 = vadd.f32 %v3600_v2, %v1872_v46 }
 0x1dd   : > { %2041 = vst.msk [vmem:[%s3620_s7] sm:$0xff] %vm1412_vm3, %v2009_v55  ;;  %v1851_v59 = vadd.f32 %v1819_v61, %v3453_v36  ;;  %v1836_v48 = vadd.f32 %v1804_v23, %v3461_v10  ;;  %v1743_v14 = vpop.permute.xlu0 %1742  ;;  %v1713_v13 = vpop.permute.xlu1 %1712 }
 0x1de   : > { %vm1956_vm0 = vcmp.gt.f32.partialorder %v1924_v50, 0.0  ;;  %v1993_v37 = vmul.f32 %v3607_v29, %v1924_v50  ;;  %vm1941_vm1 = vcmp.gt.f32.partialorder %v1909_v39, 0.0  ;;  %v1978_v32 = vmul.f32 %v3607_v29, %v1909_v39 }
 0x1df   : > { %v1888_v17 = vmul.f32 %v3593_v40, %v1851_v59  ;;  %v1873_v31 = vmul.f32 %v3593_v40, %v1836_v48  ;;  %v1820_v8 = vadd.f32 %v1743_v14, %v3415_v28  ;;  %v1805_v55 = vadd.f32 %v1713_v13, %v3421_v7 }
 0x1e0   : > { %v2025_v52 = vsel %vm1956_vm0, %v1924_v50, %v1993_v37  ;;  %v2010_v36 = vsel %vm1941_vm1, %v1909_v39, %v1978_v32 }
 0x1e1   : > { %2057 = vst.msk [vmem:[%s3620_s7 + $0x80] sm:$0xff] %vm1412_vm3, %v2025_v52  ;;  %2042 = vst.msk [vmem:[%s3620_s7 + $0x8] sm:$0xff] %vm1412_vm3, %v2010_v36  ;;  %v1925_v10 = vadd.f32 %v3600_v2, %v1888_v17  ;;  %v1910_v12 = vadd.f32 %v3600_v2, %v1873_v31  ;;  %v1852_v62 = vadd.f32 %v1820_v8, %v3467_v19  ;;  %v1745_v46 = vpop.permute.xlu1 %1744  ;;  %v1715_v61 = vpop.permute.xlu0 %1714 }
 0x1e2   : > { %v1837_v51 = vadd.f32 %v1805_v55, %v3473_v47  ;;  %v1821_v28 = vadd.f32 %v1745_v46, %v3423_v0  ;;  %v1806_v7 = vadd.f32 %v1715_v61, %v3431_v41 }
 0x1e3   : > { %vm1957_vm2 = vcmp.gt.f32.partialorder %v1925_v10, 0.0  ;;  %v1994_v50 = vmul.f32 %v3607_v29, %v1925_v10  ;;  %vm1942_vm4 = vcmp.gt.f32.partialorder %v1910_v12, 0.0  ;;  %v1979_v23 = vmul.f32 %v3607_v29, %v1910_v12 }
 0x1e4   : > { %v1889_v39 = vmul.f32 %v3593_v40, %v1852_v62  ;;  %v1874_v19 = vmul.f32 %v3593_v40, %v1837_v51  ;;  %v1853_v47 = vadd.f32 %v1821_v28, %v3479_v34  ;;  %v1838_v59 = vadd.f32 %v1806_v7, %v3485_v53 }
 0x1e5   : > { %v2026_v48 = vsel %vm1957_vm2, %v1925_v10, %v1994_v50  ;;  %v2011_v14 = vsel %vm1942_vm4, %v1910_v12, %v1979_v23  ;;  %v1747_v13 = vpop.permute.xlu0 %1746  ;;  %v1717_v0 = vpop.permute.xlu1 %1716 }
 0x1e6   : > { %2058 = vst.msk [vmem:[%s3620_s7 + $0x88] sm:$0xff] %vm1412_vm3, %v2026_v48  ;;  %2043 = vst.msk [vmem:[%s3620_s7 + $0x10] sm:$0xff] %vm1412_vm3, %v2011_v14  ;;  %v1926_v41 = vadd.f32 %v3600_v2, %v1889_v39  ;;  %v1911_v37 = vadd.f32 %v3600_v2, %v1874_v19  ;;  %v1890_v32 = vmul.f32 %v3593_v40, %v1853_v47 }
 0x1e7   : > { %v1875_v17 = vmul.f32 %v3593_v40, %v1838_v59  ;;  %v1822_v34 = vadd.f32 %v1747_v13, %v3433_v26  ;;  %v1807_v53 = vadd.f32 %v1717_v0, %v3443_v11 }
 0x1e8   : > { %vm1958_vm5 = vcmp.gt.f32.partialorder %v1926_v41, 0.0  ;;  %v1995_v31 = vmul.f32 %v3607_v29, %v1926_v41  ;;  %vm1943_vm6 = vcmp.gt.f32.partialorder %v1911_v37, 0.0  ;;  %v1980_v8 = vmul.f32 %v3607_v29, %v1911_v37 }
 0x1e9   : > { %v1927_v55 = vadd.f32 %v3600_v2, %v1890_v32  ;;  %v1912_v52 = vadd.f32 %v3600_v2, %v1875_v17  ;;  %v1854_v36 = vadd.f32 %v1822_v34, %v3491_v4  ;;  %v1839_v10 = vadd.f32 %v1807_v53, %v3497_v30  ;;  %v1749_v12 = vpop.permute.xlu1 %1748  ;;  %v1719_v26 = vpop.permute.xlu0 %1718 }
 0x1ea   : > { %v2027_v62 = vsel %vm1958_vm5, %v1926_v41, %v1995_v31  ;;  %v2012_v51 = vsel %vm1943_vm6, %v1911_v37, %v1980_v8  ;;  %v1823_v11 = vadd.f32 %v1749_v12, %v3445_v6  ;;  %v1808_v46 = vadd.f32 %v1719_v26, %v3455_v9 }
 0x1eb   : > { %2059 = vst.msk [vmem:[%s3620_s7 + $0x90] sm:$0xff] %vm1412_vm3, %v2027_v62  ;;  %2044 = vst.msk [vmem:[%s3620_s7 + $0x18] sm:$0xff] %vm1412_vm3, %v2012_v51  ;;  %vm1959_vm7 = vcmp.gt.f32.partialorder %v1927_v55, 0.0  ;;  %v1996_v61 = vmul.f32 %v3607_v29, %v1927_v55  ;;  %vm1944_vm8 = vcmp.gt.f32.partialorder %v1912_v52, 0.0  ;;  %v1981_v4 = vmul.f32 %v3607_v29, %v1912_v52 }
 0x1ec   : > { %v1891_v30 = vmul.f32 %v3593_v40, %v1854_v36  ;;  %v1876_v28 = vmul.f32 %v3593_v40, %v1839_v10  ;;  %v1855_v6 = vadd.f32 %v1823_v11, %v3503_v45  ;;  %v1840_v7 = vadd.f32 %v1808_v46, %v3509_v35 }
 0x1ed   : > { %v2028_v9 = vsel %vm1959_vm7, %v1927_v55, %v1996_v61  ;;  %v2013_v50 = vsel %vm1944_vm8, %v1912_v52, %v1981_v4  ;;  %v1751_v23 = vpop.permute.xlu0 %1750  ;;  %v1721_v39 = vpop.permute.xlu1 %1720 }
 0x1ee   : > { %2060 = vst.msk [vmem:[%s3620_s7 + $0x98] sm:$0xff] %vm1412_vm3, %v2028_v9  ;;  %2045 = vst.msk [vmem:[%s3620_s7 + $0x20] sm:$0xff] %vm1412_vm3, %v2013_v50  ;;  %v1928_v19 = vadd.f32 %v3600_v2, %v1891_v30  ;;  %v1913_v47 = vadd.f32 %v3600_v2, %v1876_v28  ;;  %v1892_v59 = vmul.f32 %v3593_v40, %v1855_v6 }
 0x1ef   : > { %v1877_v48 = vmul.f32 %v3593_v40, %v1840_v7  ;;  %v1824_v45 = vadd.f32 %v1751_v23, %v3463_v42  ;;  %v1809_v35 = vadd.f32 %v1721_v39, %v3465_v20 }
 0x1f0   : > { %vm1960_vm9 = vcmp.gt.f32.partialorder %v1928_v19, 0.0  ;;  %v1997_v14 = vmul.f32 %v3607_v29, %v1928_v19  ;;  %vm1945_vm10 = vcmp.gt.f32.partialorder %v1913_v47, 0.0  ;;  %v1982_v13 = vmul.f32 %v3607_v29, %v1913_v47 }
 0x1f1   : > { %v1929_v0 = vadd.f32 %v3600_v2, %v1892_v59  ;;  %v1914_v41 = vadd.f32 %v3600_v2, %v1877_v48  ;;  %v1856_v37 = vadd.f32 %v1824_v45, %v3515_v27  ;;  %v1841_v32 = vadd.f32 %v1809_v35, %v3521_v57  ;;  %v1753_v17 = vpop.permute.xlu1 %1752  ;;  %v1723_v42 = vpop.permute.xlu0 %1722 }
 0x1f2   : > { %v2029_v34 = vsel %vm1960_vm9, %v1928_v19, %v1997_v14  ;;  %v2014_v53 = vsel %vm1945_vm10, %v1913_v47, %v1982_v13  ;;  %v1825_v20 = vadd.f32 %v1753_v17, %v3475_v18  ;;  %v1810_v31 = vadd.f32 %v1723_v42, %v3477_v60 }
 0x1f3   : > { %2061 = vst.msk [vmem:[%s3620_s7 + $0xa0] sm:$0xff] %vm1412_vm3, %v2029_v34  ;;  %2046 = vst.msk [vmem:[%s3620_s7 + $0x28] sm:$0xff] %vm1412_vm3, %v2014_v53  ;;  %vm1961_vm11 = vcmp.gt.f32.partialorder %v1929_v0, 0.0  ;;  %v1998_v8 = vmul.f32 %v3607_v29, %v1929_v0  ;;  %vm1946_vm12 = vcmp.gt.f32.partialorder %v1914_v41, 0.0  ;;  %v1983_v27 = vmul.f32 %v3607_v29, %v1914_v41 }
 0x1f4   : > { %v1893_v57 = vmul.f32 %v3593_v40, %v1856_v37  ;;  %v1878_v55 = vmul.f32 %v3593_v40, %v1841_v32  ;;  %v1857_v18 = vadd.f32 %v1825_v20, %v3527_v22  ;;  %v1842_v52 = vadd.f32 %v1810_v31, %v3533_v44 }
 0x1f5   : > { %v2030_v60 = vsel %vm1961_vm11, %v1929_v0, %v1998_v8  ;;  %v2015_v36 = vsel %vm1946_vm12, %v1914_v41, %v1983_v27  ;;  %v1755_v10 = vpop.permute.xlu0 %1754  ;;  %v1725_v12 = vpop.permute.xlu1 %1724 }
 0x1f6   : > { %2062 = vst.msk [vmem:[%s3620_s7 + $0xa8] sm:$0xff] %vm1412_vm3, %v2030_v60  ;;  %2047 = vst.msk [vmem:[%s3620_s7 + $0x30] sm:$0xff] %vm1412_vm3, %v2015_v36  ;;  %v1930_v26 = vadd.f32 %v3600_v2, %v1893_v57  ;;  %v1915_v62 = vadd.f32 %v3600_v2, %v1878_v55  ;;  %v1894_v51 = vmul.f32 %v3593_v40, %v1857_v18 }
 0x1f7   : > { %v1879_v11 = vmul.f32 %v3593_v40, %v1842_v52  ;;  %v1826_v22 = vadd.f32 %v1755_v10, %v3487_v21  ;;  %v1811_v44 = vadd.f32 %v1725_v12, %v3489_v5 }
 0x1f8   : > { %vm1962_vm13 = vcmp.gt.f32.partialorder %v1930_v26, 0.0  ;;  %v1999_v46 = vmul.f32 %v3607_v29, %v1930_v26  ;;  %vm1947_vm14 = vcmp.gt.f32.partialorder %v1915_v62, 0.0  ;;  %v1984_v61 = vmul.f32 %v3607_v29, %v1915_v62 }
 0x1f9   : > { %v1931_v4 = vadd.f32 %v3600_v2, %v1894_v51  ;;  %v1916_v30 = vadd.f32 %v3600_v2, %v1879_v11  ;;  %v1858_v28 = vadd.f32 %v1826_v22, %v3543_v15  ;;  %v1843_v6 = vadd.f32 %v1811_v44, %v3545_v58  ;;  %v1757_v7 = vpop.permute.xlu1 %1756  ;;  %v1727_v21 = vpop.permute.xlu0 %1726 }
 0x1fa   : > { %v2031_v9 = vsel %vm1962_vm13, %v1930_v26, %v1999_v46  ;;  %v2016_v50 = vsel %vm1947_vm14, %v1915_v62, %v1984_v61  ;;  %v1827_v5 = vadd.f32 %v1757_v7, %v3499_v63  ;;  %v1812_v23 = vadd.f32 %v1727_v21, %v3501_v33  ;;  %v4017_v46 = vld [vmem:[#allocation6_spill] sm:$0xff]  ;;  %v4018_v7 = vld [vmem:[#allocation9_spill] sm:$0xff] }
 0x1fb   : > { %2063 = vst.msk [vmem:[%s3620_s7 + $0xb0] sm:$0xff] %vm1412_vm3, %v2031_v9  ;;  %2048 = vst.msk [vmem:[%s3620_s7 + $0x38] sm:$0xff] %vm1412_vm3, %v2016_v50  ;;  %vm1963_vm15 = vcmp.gt.f32.partialorder %v1931_v4, 0.0  ;;  %v2000_v39 = vmul.f32 %v3607_v29, %v1931_v4  ;;  %vm1948_vm0 = vcmp.gt.f32.partialorder %v1916_v30, 0.0  ;;  %v1985_v15 = vmul.f32 %v3607_v29, %v1916_v30 }
 0x1fc   : > { %v1895_v58 = vmul.f32 %v3593_v40, %v1858_v28  ;;  %v1880_v19 = vmul.f32 %v3593_v40, %v1843_v6  ;;  %v1859_v63 = vadd.f32 %v1827_v5, %v3555_v16  ;;  %v1844_v47 = vadd.f32 %v1812_v23, %v3557_v25 }
 0x1fd   : > { %v2032_v33 = vsel %vm1963_vm15, %v1931_v4, %v2000_v39  ;;  %v2017_v59 = vsel %vm1948_vm0, %v1916_v30, %v1985_v15  ;;  %v1759_v48 = vpop.permute.xlu0 %1758  ;;  %v1729_v45 = vpop.permute.xlu1 %1728 }
 0x1fe   : > { %2064 = vst.msk [vmem:[%s3620_s7 + $0xb8] sm:$0xff] %vm1412_vm3, %v2032_v33  ;;  %2049 = vst.msk [vmem:[%s3620_s7 + $0x40] sm:$0xff] %vm1412_vm3, %v2017_v59  ;;  %v1932_v35 = vadd.f32 %v3600_v2, %v1895_v58  ;;  %v1917_v14 = vadd.f32 %v3600_v2, %v1880_v19  ;;  %v1896_v13 = vmul.f32 %v3593_v40, %v1859_v63  ;;  %v4019_v19 = vld [vmem:[#allocation14_spill] sm:$0xff] }
 0x1ff   : > { %v1881_v0 = vmul.f32 %v3593_v40, %v1844_v47  ;;  %v1828_v16 = vadd.f32 %v1759_v48, %v3511_v38  ;;  %v1813_v25 = vadd.f32 %v1729_v45, %v3513_v3  ;;  %v4020_v47 = vld [vmem:[#allocation13_spill] sm:$0xff] }
 0x200   : > { %vm1964_vm1 = vcmp.gt.f32.partialorder %v1932_v35, 0.0  ;;  %v2001_v41 = vmul.f32 %v3607_v29, %v1932_v35  ;;  %vm1949_vm2 = vcmp.gt.f32.partialorder %v1917_v14, 0.0  ;;  %v1986_v37 = vmul.f32 %v3607_v29, %v1917_v14 }
 0x201   : > { %v1933_v32 = vadd.f32 %v3600_v2, %v1896_v13  ;;  %v1918_v17 = vadd.f32 %v3600_v2, %v1881_v0  ;;  %v1860_v42 = vadd.f32 %v1828_v16, %v3569_v1  ;;  %v1845_v34 = vadd.f32 %v1813_v25, %v3565_v56  ;;  %v1761_v53 = vpop.permute.xlu1 %1760  ;;  %v1731_v31 = vpop.permute.xlu0 %1730  ;;  %v4022_v13 = vld [vmem:[#allocation10_spill] sm:$0xff] }
 0x202   : > { %v2033_v20 = vsel %vm1964_vm1, %v1932_v35, %v2001_v41  ;;  %v2018_v38 = vsel %vm1949_vm2, %v1917_v14, %v1986_v37  ;;  %v1829_v3 = vadd.f32 %v1761_v53, %v3523_v49  ;;  %v1814_v55 = vadd.f32 %v1731_v31, %v3525_v24  ;;  %v1583_v24 = vpop.f32.mrf.mxu0  ;;  %v4021_v35 = vld [vmem:[#allocation17_spill] sm:$0xff]  ;;  %v4023_v37 = vld [vmem:[#allocation15_spill] sm:$0xff]  ;;  %v4024_v53 = vld [vmem:[#allocation8_spill] sm:$0xff] }
 0x203   : > { %2065 = vst.msk [vmem:[%s3620_s7 + $0xc0] sm:$0xff] %vm1412_vm3, %v2033_v20  ;;  %2050 = vst.msk [vmem:[%s3620_s7 + $0x48] sm:$0xff] %vm1412_vm3, %v2018_v38  ;;  %vm1965_vm4 = vcmp.gt.f32.partialorder %v1933_v32, 0.0  ;;  %v2002_v8 = vmul.f32 %v3607_v29, %v1933_v32  ;;  %vm1950_vm5 = vcmp.gt.f32.partialorder %v1918_v17, 0.0  ;;  %v1987_v1 = vmul.f32 %v3607_v29, %v1918_v17 }
 0x204   : > { %v1897_v56 = vmul.f32 %v3593_v40, %v1860_v42  ;;  %v1882_v27 = vmul.f32 %v3593_v40, %v1845_v34  ;;  %v1861_v57 = vadd.f32 %v1829_v3, %v3576_v54  ;;  %v1846_v10 = vadd.f32 %v1814_v55, %v3578_v43  ;;  %v4016_v54 = vld [vmem:[#allocation7_spill] sm:$0xff] }
 0x205   : > { %v2034_v49 = vsel %vm1965_vm4, %v1933_v32, %v2002_v8  ;;  %v2019_v18 = vsel %vm1950_vm5, %v1918_v17, %v1987_v1  ;;  %v1733_v12 = vpop.permute.xlu1 %1732  ;;  %v1763_v11 = vpop.permute.xlu0 %1762  ;;  %v4025_v3 = vld [vmem:[#allocation11_spill] sm:$0xff] }
 0x206   : > { %2066 = vst.msk [vmem:[%s3620_s7 + $0xc8] sm:$0xff] %vm1412_vm3, %v2034_v49  ;;  %2051 = vst.msk [vmem:[%s3620_s7 + $0x50] sm:$0xff] %vm1412_vm3, %v2019_v18  ;;  %v1934_v52 = vadd.f32 %v3600_v2, %v1897_v56  ;;  %v1919_v60 = vadd.f32 %v3600_v2, %v1882_v27  ;;  %v1898_v36 = vmul.f32 %v3593_v40, %v1861_v57  ;;  %v4026_v56 = vld [vmem:[#allocation12_spill] sm:$0xff] }
 0x207   : > { %v1815_v26 = vadd.f32 %v1733_v12, %v4016_v54  ;;  %v1883_v44 = vmul.f32 %v3593_v40, %v1846_v10  ;;  %v1830_v61 = vadd.f32 %v1763_v11, %v4017_v46 }
 0x208   : > { %vm1966_vm6 = vcmp.gt.f32.partialorder %v1934_v52, 0.0  ;;  %v2003_v62 = vmul.f32 %v3607_v29, %v1934_v52  ;;  %vm1951_vm7 = vcmp.gt.f32.partialorder %v1919_v60, 0.0  ;;  %v1988_v51 = vmul.f32 %v3607_v29, %v1919_v60 }
 0x209   : > { %v1935_v22 = vadd.f32 %v3600_v2, %v1898_v36  ;;  %v1847_v4 = vadd.f32 %v1815_v26, %v1583_v24  ;;  %v1920_v6 = vadd.f32 %v3600_v2, %v1883_v44  ;;  %v1862_v21 = vadd.f32 %v1830_v61, %v4018_v7  ;;  %v1765_v50 = vpop.permute.xlu1 %1764  ;;  %v1735_v5 = vpop.permute.xlu0 %1734  ;;  %v4027_v36 = vld [vmem:[#allocation16_spill] sm:$0xff] }
 0x20a   : > { %v2035_v43 = vsel %vm1966_vm6, %v1934_v52, %v2003_v62  ;;  %v2020_v30 = vsel %vm1951_vm7, %v1919_v60, %v1988_v51  ;;  %v1831_v63 = vadd.f32 %v1765_v50, %v4019_v19  ;;  %v1816_v33 = vadd.f32 %v1735_v5, %v4020_v47  ;;  %v1671_v26 = vpop.f32.mrf.mxu1 }
 0x20b   : > { %2067 = vst.msk [vmem:[%s3620_s7 + $0xd0] sm:$0xff] %vm1412_vm3, %v2035_v43  ;;  %2052 = vst.msk [vmem:[%s3620_s7 + $0x58] sm:$0xff] %vm1412_vm3, %v2020_v30  ;;  %vm1967_vm8 = vcmp.gt.f32.partialorder %v1935_v22, 0.0  ;;  %v2004_v28 = vmul.f32 %v3607_v29, %v1935_v22  ;;  %v1884_v9 = vmul.f32 %v3593_v40, %v1847_v4  ;;  %vm1952_vm9 = vcmp.gt.f32.partialorder %v1920_v6, 0.0 }
 0x20c   : > { %v1989_v39 = vmul.f32 %v3607_v29, %v1920_v6  ;;  %v1899_v15 = vmul.f32 %v3593_v40, %v1862_v21  ;;  %v1863_v14 = vadd.f32 %v1831_v63, %v4021_v35  ;;  %v1848_v0 = vadd.f32 %v1816_v33, %v4022_v13 }
 0x20d   : > { %v2036_v23 = vsel %vm1967_vm8, %v1935_v22, %v2004_v28  ;;  %v1921_v58 = vadd.f32 %v3600_v2, %v1884_v9  ;;  %v1737_v16 = vpop.permute.xlu1 %1736 }
 0x20e   : > { %2068 = vst.msk [vmem:[%s3620_s7 + $0xd8] sm:$0xff] %vm1412_vm3, %v2036_v23  ;;  %v2021_v59 = vsel %vm1952_vm9, %v1920_v6, %v1989_v39  ;;  %v1936_v48 = vadd.f32 %v3600_v2, %v1899_v15  ;;  %v1767_v41 = vpop.permute.xlu0 %1766  ;;  %v1817_v32 = vadd.f32 %v1737_v16, %v4023_v37  ;;  %v1900_v42 = vmul.f32 %v3593_v40, %v1863_v14 }
 0x20f   : > { %2053 = vst.msk [vmem:[%s3620_s7 + $0x60] sm:$0xff] %vm1412_vm3, %v2021_v59  ;;  %vm1953_vm10 = vcmp.gt.f32.partialorder %v1921_v58, 0.0  ;;  %v1990_v45 = vmul.f32 %v3607_v29, %v1921_v58  ;;  %v1885_v34 = vmul.f32 %v3593_v40, %v1848_v0  ;;  %v1832_v20 = vadd.f32 %v1767_v41, %v4024_v53 }
 0x210   : > { %vm1968_vm11 = vcmp.gt.f32.partialorder %v1936_v48, 0.0  ;;  %v2005_v25 = vmul.f32 %v3607_v29, %v1936_v48  ;;  %v1849_v31 = vadd.f32 %v1817_v32, %v4025_v3  ;;  %v1937_v8 = vadd.f32 %v3600_v2, %v1900_v42 }
 0x211   : > { %v2022_v17 = vsel %vm1953_vm10, %v1921_v58, %v1990_v45  ;;  %v1922_v1 = vadd.f32 %v3600_v2, %v1885_v34  ;;  %v1864_v27 = vadd.f32 %v1832_v20, %v4026_v56 }
 0x212   : > { %v2037_v38 = vsel %vm1968_vm11, %v1936_v48, %v2005_v25  ;;  %2054 = vst.msk [vmem:[%s3620_s7 + $0x68] sm:$0xff] %vm1412_vm3, %v2022_v17  ;;  %v1886_v57 = vmul.f32 %v3593_v40, %v1849_v31  ;;  %v1769_v55 = vpop.permute.xlu1 %1768  ;;  %vm1969_vm12 = vcmp.gt.f32.partialorder %v1937_v8, 0.0  ;;  %v2006_v49 = vmul.f32 %v3607_v29, %v1937_v8 }
 0x213   : > { %2069 = vst.msk [vmem:[%s3620_s7 + $0xe0] sm:$0xff] %vm1412_vm3, %v2037_v38  ;;  %vm1954_vm13 = vcmp.gt.f32.partialorder %v1922_v1, 0.0  ;;  %v1991_v18 = vmul.f32 %v3607_v29, %v1922_v1  ;;  %v1901_v52 = vmul.f32 %v3593_v40, %v1864_v27  ;;  %v1833_v10 = vadd.f32 %v1769_v55, %v4027_v36 }
 0x214   : > { %v1923_v60 = vadd.f32 %v3600_v2, %v1886_v57  ;;  %v2038_v12 = vsel %vm1969_vm12, %v1937_v8, %v2006_v49 }
 0x215   : > { %v2023_v54 = vsel %vm1954_vm13, %v1922_v1, %v1991_v18  ;;  %2070 = vst.msk [vmem:[%s3620_s7 + $0xe8] sm:$0xff] %vm1412_vm3, %v2038_v12  ;;  %v1938_v24 = vadd.f32 %v3600_v2, %v1901_v52  ;;  %v1865_v51 = vadd.f32 %v1833_v10, %v1671_v26 }
 0x216   : > { %2055 = vst.msk [vmem:[%s3620_s7 + $0x70] sm:$0xff] %vm1412_vm3, %v2023_v54  ;;  %vm1955_vm14 = vcmp.gt.f32.partialorder %v1923_v60, 0.0  ;;  %v1992_v62 = vmul.f32 %v3607_v29, %v1923_v60 }
 0x217   : > { %vm1970_vm15 = vcmp.gt.f32.partialorder %v1938_v24, 0.0  ;;  %v2007_v11 = vmul.f32 %v3607_v29, %v1938_v24  ;;  %v1902_v44 = vmul.f32 %v3593_v40, %v1865_v51 }
 0x218   : > { %v2024_v22 = vsel %vm1955_vm14, %v1923_v60, %v1992_v62 }
 0x219   : > { %2056 = vst.msk [vmem:[%s3620_s7 + $0x78] sm:$0xff] %vm1412_vm3, %v2024_v22  ;;  %v2039_v46 = vsel %vm1970_vm15, %v1938_v24, %v2007_v11  ;;  %v1939_v61 = vadd.f32 %v3600_v2, %v1902_v44 }
 0x21a   : > { %2071 = vst.msk [vmem:[%s3620_s7 + $0xf0] sm:$0xff] %vm1412_vm3, %v2039_v46 }
 0x21b   : > { %vm1971_vm0 = vcmp.gt.f32.partialorder %v1939_v61, 0.0  ;;  %v2008_v4 = vmul.f32 %v3607_v29, %v1939_v61 }
 0x21d   : > { %v2040_v40 = vsel %vm1971_vm0, %v1939_v61, %v2008_v4 }
 0x21e   : > { %2072 = vst.msk [vmem:[%s3620_s7 + $0xf8] sm:$0xff] %vm1412_vm3, %v2040_v40 }
 0x21f   : > { %2467 = shalt.err (!%p2464_p3)
}
 0x220   : > { %s2468_s11 = scalar_lea.hbm %s3832_s19, 4096  ;;  %s2472_s30 = scalar_lea.hbm %s3883_s3, 8192 }
 0x221   : > { %p2469_p4 = scmp.ne.s32.totalorder %s3832_s19, %s2468_s11  ;;  %p2473_p9 = scmp.lt.s32.totalorder %s3832_s19, %s3883_s3 }
 0x222   : > { %p2474_p10 = scmp.lt.s32.totalorder %s2472_s30, %s2468_s11 }
 0x223   : > { %p2470_p7 = pnand %p2469_p4, %p2579_p5 }
 0x224   : > { %p2475_p11 = por %p2474_p10, %p2473_p9 }
 0x225   : > { %p2471_p8 = pneg %p2470_p7 }
 0x227   : > { %p2476_p12 = pnand %p2475_p11, %p2471_p8 }
 0x229   : > { %2479 = shalt.err (!%p2476_p12)
}
 0x22a   : > { %s2519_s5 = smov 128   ;;  %s2520_s6 = smov 8  }
 0x22b   : > { %2332 = dma.vmem_to_hbm [thread:$0]  (%p2579_p5), %s3834_s9, 4096, %s3832_s19, %s3840_s16, %s2519_s5, %s2519_s5, %s2520_s6  }
 0x22c PF: > { %p2338_p13 = scmp.ge.s32.totalorder %s2514_s15, 2  ;;  %s2102_s7 = sand.u32 1, %s2502_s12  }
 0x22d   : > { %s2103_s8 = scalar_lea.sflag [#allocation4], %s2102_s7 }
 0x22e   : > { %p2335_p0 = pnand %p2338_p13, %p2583_p6 }
 0x230   : > { %p2336_p1 = pneg %p2335_p0 }
 0x232   : > { %2497 = dma.done.wait (%p2336_p1), %s2103_s8, 4096  }
 0x233   : > { %2499 = vsyncadd (%p2336_p1), %s2103_s8, 4294963200  ;;  %p13_p2 = scmp.ge.s32.totalorder %s2566_s18, 4   ;;  %s4028_s12 = smov %s2506_s13 }
 0x234   : > { %s4029_s13 = smov %s2510_s14  ;;  %s4030_s14 = smov %s2577_s21 }
 0x235   : > { %s4031_s15 = smov %s2566_s18  ;;  %15 = sbr.rel (!%p13_p2) target bundleno = 3 (0x3), region = 68 }
 0x23a   :  { %2108 = vsyncpa [#allocation4], 1 }
 0x23b   :  { %2110 = vsyncpa [#allocation4 + $0x1], 1 }

</bundles_post_ra>
